<compile_context>
chip_gen: v6e
topology: v6e:2x2x1
jax: 0.10.0
libtpu: 0.0.40
codegen_flags: <defaults>
</compile_context>

<pallas_src>
import functools

import jax
import jax.numpy as jnp
from jax.experimental import pallas as pl
from jax.experimental.pallas import tpu as pltpu


# ----------------------------------------------------------------------------
# Kernel: one row-tile of x -> one fused MXU pass -> q tile and kv tile.
# ----------------------------------------------------------------------------
def _qkv_fused_kernel(x_ref, w_ref, b_ref, q_ref, kv_ref, *, qk_dim, kv_start,
                      precision):
    # Single matmul over the (column-padded) packed weight: x is streamed
    # through the MXU once.  f32 accumulation regardless of operand dtype.
    y = jnp.dot(x_ref[...], w_ref[...],
                preferred_element_type=jnp.float32,
                precision=precision)
    y = y + b_ref[...]                      # bias add stays in f32 (VPU)
    # Both slices start on a lane-aligned boundary (0 and a multiple of 128),
    # so these are plain vreg selections, stored to two contiguous slabs.
    q_ref[...] = y[:, :qk_dim].astype(q_ref.dtype)
    kv_ref[...] = y[:, kv_start:].astype(kv_ref.dtype)


# ----------------------------------------------------------------------------
# Row-tile chooser: big tiles, minimal padding, >=2 grid steps when possible.
# ----------------------------------------------------------------------------
def _choose_row_tile(m, cap=1024):
    """Return (m_pad, tm) with tm | m_pad, tm <= cap, tm % 8 == 0."""
    cap = max(8, (cap // 8) * 8)
    m8 = max(8, ((m + 7) // 8) * 8)          # sublane (8) alignment
    if m8 <= cap:
        half = m8 // 2
        if half >= 128 and half % 8 == 0:
            return m8, half                  # 2 grid steps -> both v7x TCs busy
        return m8, m8                        # tiny input: single block
    # Large input: largest multiple-of-8 divisor of m8 that is <= cap.
    for tm in range(cap, 127, -8):
        if m8 % tm == 0:
            return m8, tm                    # m8 > cap >= tm  =>  grid >= 2
    # Rare awkward row count: fall back to padding to a fixed tile.
    tm = min(cap, 512)
    return pl.cdiv(m, tm) * tm, tm


# ----------------------------------------------------------------------------
# Wrapper.  w_qkv is the nn.Linear weight stored pre-transposed: (dim, out_dim)
# with out_dim = 2*qk_dim + dim; b_qkv has shape (out_dim,).
# ----------------------------------------------------------------------------
def qkv_linear(x, w_qkv, b_qkv, *, qk_dim, block_m=1024, mxu_bf16=False):
    *lead, dim = x.shape
    out_dim = w_qkv.shape[1]
    kv_dim = out_dim - qk_dim
    assert w_qkv.shape[0] == dim
    assert b_qkv.shape == (out_dim,)

    M = 1
    for d in lead:
        M *= d
    x2 = x.reshape(M, dim)

    m_pad, tm = _choose_row_tile(M, block_m)
    if m_pad != M:
        # Only reached for non-multiple-of-8 row counts or pathological M
        # (at most a few zero rows in the common case).
        x2 = jnp.pad(x2, ((0, m_pad - M), (0, 0)))

    # --- One-time, parameter-sized packing (off the activation path). -------
    # Pad the q column block up to a multiple of 128 lanes so the kv slice in
    # the kernel starts on a 128-lane boundary (no XLU realignment).
    qk_pad = ((qk_dim + 127) // 128) * 128
    if qk_pad == qk_dim:
        w_packed = w_qkv
        b_packed = b_qkv.reshape(1, out_dim)
    else:
        pad_cols = qk_pad - qk_dim
        w_packed = jnp.concatenate(
            [w_qkv[:, :qk_dim],
             jnp.zeros((dim, pad_cols), w_qkv.dtype),
             w_qkv[:, qk_dim:]], axis=1)
        b_packed = jnp.concatenate(
            [b_qkv[:qk_dim],
             jnp.zeros((pad_cols,), b_qkv.dtype),
             b_qkv[qk_dim:]]).reshape(1, -1)
    out_pad = qk_pad + kv_dim

    # Optional bf16 MXU operands (halves HBM traffic / native MXU rate).
    if mxu_bf16:
        x_in = x2.astype(jnp.bfloat16)
        w_in = w_packed.astype(jnp.bfloat16)
        precision = jax.lax.Precision.DEFAULT
    else:
        x_in = x2
        w_in = w_packed
        precision = jax.lax.Precision.HIGHEST   # match PyTorch f32 Linear
    b_in = b_packed.astype(jnp.float32)          # bias add / accum stay f32

    grid = (m_pad // tm,)
    out_itemsize = jnp.dtype(x.dtype).itemsize
    cost = pl.CostEstimate(
        flops=2 * m_pad * dim * out_pad,
        transcendentals=0,
        bytes_accessed=(x_in.size * x_in.dtype.itemsize
                        + w_in.size * w_in.dtype.itemsize
                        + b_in.size * b_in.dtype.itemsize
                        + m_pad * out_dim * out_itemsize),
    )

    kernel = functools.partial(_qkv_fused_kernel, qk_dim=qk_dim,
                               kv_start=qk_pad, precision=precision)

    q2, kv2 = pl.pallas_call(
        kernel,
        out_shape=(
            jax.ShapeDtypeStruct((m_pad, qk_dim), x.dtype),
            jax.ShapeDtypeStruct((m_pad, kv_dim), x.dtype),
        ),
        grid=grid,
        in_specs=[
            pl.BlockSpec((tm, dim), lambda i: (i, 0)),       # x row tile
            pl.BlockSpec((dim, out_pad), lambda i: (0, 0)),  # packed W (VMEM-resident)
            pl.BlockSpec((1, out_pad), lambda i: (0, 0)),    # packed b (VMEM-resident)
        ],
        out_specs=(
            pl.BlockSpec((tm, qk_dim), lambda i: (i, 0)),    # q slab
            pl.BlockSpec((tm, kv_dim), lambda i: (i, 0)),    # kv slab
        ),
        compiler_params=pltpu.CompilerParams(
            dimension_semantics=("parallel",)),
        cost_estimate=cost,
    )(x_in, w_in, b_in)

    if m_pad != M:
        q2, kv2 = q2[:M], kv2[:M]
    q = q2.reshape(*lead, qk_dim)
    kv = kv2.reshape(*lead, kv_dim)
    return q, kv


# ----------------------------------------------------------------------------
# Pure-JAX reference (mirrors the PyTorch forward) for the correctness check.
# ----------------------------------------------------------------------------
def reference(x, w_qkv, b_qkv, qk_dim):
    y = jnp.einsum("...d,de->...e", x, w_qkv,
                   precision=jax.lax.Precision.HIGHEST) + b_qkv
    return y[..., :qk_dim], y[..., qk_dim:]


if __name__ == "__main__":
    B, H, W = 2, 16, 16
    dim, qk_dim = 64, 64          # out_dim = qk_dim + qk_dim + dim = 192

    key = jax.random.PRNGKey(0)
    k0, k1, k2 = jax.random.split(key, 3)
    x = jax.random.normal(k0, (B, H, W, dim), jnp.float32)
    # torch nn.Linear weight is (out, in); stored here pre-transposed (in, out).
    w_qkv = jax.random.normal(k1, (dim, 2 * qk_dim + dim), jnp.float32) * 0.05
    b_qkv = jax.random.normal(k2, (2 * qk_dim + dim,), jnp.float32) * 0.05

    q, kv = qkv_linear(x, w_qkv, b_qkv, qk_dim=qk_dim)
    q, kv = jax.block_until_ready((q, kv))

    q_ref, kv_ref = reference(x, w_qkv, b_qkv, qk_dim)
    assert q.shape == (B, H, W, qk_dim)
    assert kv.shape == (B, H, W, qk_dim + dim)
    assert jnp.allclose(q, q_ref, atol=2e-3, rtol=2e-3), \
        float(jnp.max(jnp.abs(q - q_ref)))
    assert jnp.allclose(kv, kv_ref, atol=2e-3, rtol=2e-3), \
        float(jnp.max(jnp.abs(kv - kv_ref)))

    print("KERNEL_OK")
</pallas_src>

<mosaic_0001>
module attributes {stable_mosaic.version = 11 : i64} {
  func.func @_qkv_fused_kernel(%arg0: i32, %arg1: memref<256x64xf32, #tpu.memory_space<vmem>>, %arg2: memref<64x256xf32, #tpu.memory_space<vmem>>, %arg3: memref<1x256xf32, #tpu.memory_space<vmem>>, %arg4: memref<256x64xf32, #tpu.memory_space<vmem>>, %arg5: memref<256x128xf32, #tpu.memory_space<vmem>>) attributes {dimension_semantics = [#tpu.dimension_semantics<parallel>], iteration_bounds = array<i64: 2>, scalar_prefetch = 0 : i64, scratch_operands = 0 : i64, tpu.core_type = #tpu.core_type<tc>, window_params = [{transform_indices = @transform_0, window_bounds = array<i64: 256, 64>}, {pipeline_mode = #tpu.pipeline_mode<synchronous>, transform_indices = @transform_1, window_bounds = array<i64: 64, 256>}, {pipeline_mode = #tpu.pipeline_mode<synchronous>, transform_indices = @transform_2, window_bounds = array<i64: 1, 256>}, {transform_indices = @transform_3, window_bounds = array<i64: 256, 64>}, {transform_indices = @transform_4, window_bounds = array<i64: 256, 128>}]} {
    %c0 = arith.constant 0 : index
    %c0_0 = arith.constant 0 : index
    %0 = vector.load %arg1[%c0, %c0_0] : memref<256x64xf32, #tpu.memory_space<vmem>>, vector<256x64xf32>
    %c0_1 = arith.constant 0 : index
    %c0_2 = arith.constant 0 : index
    %1 = vector.load %arg2[%c0_1, %c0_2] : memref<64x256xf32, #tpu.memory_space<vmem>>, vector<64x256xf32>
    %cst = arith.constant dense<0.000000e+00> : vector<256x256xf32>
    %2 = tpu.matmul %0, %1, %cst {dimension_numbers = #tpu.dot_dimension_numbers<[1], [0], [0], [1], [0, 0, 1, 1], [], []>, precision = #tpu.contract_precision<fp32>} : vector<256x64xf32>, vector<64x256xf32>, vector<256x256xf32> -> vector<256x256xf32>
    %c0_3 = arith.constant 0 : index
    %c0_4 = arith.constant 0 : index
    %3 = vector.load %arg3[%c0_3, %c0_4] : memref<1x256xf32, #tpu.memory_space<vmem>>, vector<1x256xf32>
    %4 = vector.broadcast %3 : vector<1x256xf32> to vector<256x256xf32>
    %5 = arith.addf %2, %4 : vector<256x256xf32>
    %6 = vector.extract_strided_slice %5 {offsets = [0, 0], sizes = [256, 64], strides = [1, 1]} : vector<256x256xf32> to vector<256x64xf32>
    %c0_5 = arith.constant 0 : index
    %c0_6 = arith.constant 0 : index
    %7 = vector.load %arg4[%c0_5, %c0_6] : memref<256x64xf32, #tpu.memory_space<vmem>>, vector<256x64xf32>
    tpu.vector_store %arg4[%c0_5, %c0_6], %6 {strides = array<i32>} : memref<256x64xf32, #tpu.memory_space<vmem>>, vector<256x64xf32>,
    %8 = vector.extract_strided_slice %5 {offsets = [0, 128], sizes = [256, 128], strides = [1, 1]} : vector<256x256xf32> to vector<256x128xf32>
    %c0_7 = arith.constant 0 : index
    %c0_8 = arith.constant 0 : index
    %9 = vector.load %arg5[%c0_7, %c0_8] : memref<256x128xf32, #tpu.memory_space<vmem>>, vector<256x128xf32>
    tpu.vector_store %arg5[%c0_7, %c0_8], %8 {strides = array<i32>} : memref<256x128xf32, #tpu.memory_space<vmem>>, vector<256x128xf32>,
    return
  }
  func.func @transform_0(%arg0: i32) -> (i32, i32) {
    %c0_i32 = arith.constant 0 : i32
    %c0_i32_0 = arith.constant 0 : i32
    return %arg0, %c0_i32 : i32, i32
  }
  func.func @transform_1(%arg0: i32) -> (i32, i32) {
    %c0_i32 = arith.constant 0 : i32
    %c0_i32_0 = arith.constant 0 : i32
    %c0_i32_1 = arith.constant 0 : i32
    return %c0_i32, %c0_i32_0 : i32, i32
  }
  func.func @transform_2(%arg0: i32) -> (i32, i32) {
    %c0_i32 = arith.constant 0 : i32
    %c0_i32_0 = arith.constant 0 : i32
    %c0_i32_1 = arith.constant 0 : i32
    return %c0_i32, %c0_i32_0 : i32, i32
  }
  func.func @transform_3(%arg0: i32) -> (i32, i32) {
    %c0_i32 = arith.constant 0 : i32
    %c0_i32_0 = arith.constant 0 : i32
    return %arg0, %c0_i32 : i32, i32
  }
  func.func @transform_4(%arg0: i32) -> (i32, i32) {
    %c0_i32 = arith.constant 0 : i32
    %c0_i32_0 = arith.constant 0 : i32
    return %arg0, %c0_i32 : i32, i32
  }
}

</mosaic_0001>

<bundles_post_ra>
// kernel: tpu_custom_call.1
= control target key start
LH: loop header
LB: loop body
LE: loop exit
PB: predicated region body
PF: predicated region fallthrough
CT: control target
= control target key end

     0   :  { %10 = vsyncpa [#allocation3], 0  ;;  %s4591_s0 = inlined_call_operand.vmem [shape: f32[512,64], index: 0, kind: input, shape index: {}]   ;;  %s4592_s1 = inlined_call_operand.vmem [shape: f32[64,256], index: 1, kind: input, shape index: {}]   ;;  %s4593_s2 = inlined_call_operand.vmem [shape: f32[1,256], index: 2, kind: input, shape index: {}]   ;;  %s4594_s3 = inlined_call_operand.vmem [shape: f32[512,64], index: 3, kind: output, shape index: {0}]   ;;  %s4595_s4 = inlined_call_operand.hbm [shape: f32[512,128], index: 4, kind: output, shape index: {1}]  }
   0x1   :  { %12 = vsyncpa [#allocation3 + $0x1], 0  ;;  %s2858_s15 = smov 0   ;;  %s2860_s16 = smov 0  }
   0x2   :  { %s2862_s17 = smov 0   ;;  %s2864_s18 = smov 0  }
   0x3 LB: > { %s2879_s19 = sadd.s32 4294967295, %s2827_s18   ;;  %s2710_s20 = sadd.s32 4294967294, %s2827_s18   ;;  %s2827_s18 = sphi %s2864_s18, %s4927_s18   ;;  %s2823_s17 = sphi %s2862_s17, %s4926_s17   ;;  %s2819_s16 = sphi %s2860_s16, %s4925_s16   ;;  %s2815_s15 = sphi %s2858_s15, %s4924_s15  }
   0x4   : > { %s2883_s21 = sadd.s32 1, %s2827_s18   ;;  %s119_s22 = sadd.s32 1, %s2823_s17 }
   0x5   : > { %s116_s23 = ssub.s32 %s2827_s18, %s2883_s21  ;;  %p129_p0 = scmp.ne.s32.totalorder %s2823_s17, %s2819_s16 }
   0x6   : > { %p117_p1 = scmp.eq.s32.totalorder %s116_s23, 0  ;;  %p130_p2 = scmp.eq.s32.totalorder %s2879_s19, 1 }
   0x7   : > { %p135_p3 = scmp.ne.s32.totalorder %s2819_s16, %s2815_s15  ;;  %p136_p4 = scmp.eq.s32.totalorder %s2710_s20, 1 }
   0x8   : > { %s2894_s24 = scalar_select %p117_p1, %s2823_s17, %s119_s22  }
   0x9   : > { %p2896_p5 = por %p130_p2, %p129_p0  ;;  %p2900_p6 = por %p136_p4, %p135_p3 }
   0xa   : > { %p2713_p7 = scmp.ge.s32.totalorder %s2827_s18, 1  ;;  %p169_p8 = scmp.lt.s32.totalorder %s2827_s18, 3 }
   0xc   : > { %p170_p9 = pnand %p2713_p7, %p169_p8 }
   0xe   : > { %173 = sbr.rel (%p170_p9) target bundleno = 640 (0x280), region = 32 }
  0x13   : > { %v260_v0 = vld [vmem:[%s4592_s1 + $0x78] sm:$0xff]  ;;  %v259_v1 = vld [vmem:[%s4592_s1 + $0x70] sm:$0xff]  ;;  %v258_v2 = vld [vmem:[%s4592_s1 + $0x68] sm:$0xff]  ;;  %s2715_s7 = sshll.u32 %s2879_s19, 5  ;;  %vm273_vm0 = vcmask 523264   ;;  %v2829_v9 = vmov 0.0  }
  0x14   : > { %v2916_v3 = vand.u32 4294901760, %v260_v0  ;;  %v2918_v4 = vand.u32 4294901760, %v259_v1  ;;  %v2920_v5 = vand.u32 4294901760, %v258_v2  ;;  %v257_v6 = vld [vmem:[%s4592_s1 + $0x60] sm:$0xff]  ;;  %v256_v7 = vld [vmem:[%s4592_s1 + $0x58] sm:$0xff]  ;;  %v255_v8 = vld [vmem:[%s4592_s1 + $0x50] sm:$0xff]  ;;  %450 = vmatprep.mubr.f32.mxu0 %v2829_v9  ;;  %947 = vmatprep.mubr.f32.mxu1 %v2829_v9 }
  0x15   : > { %v2933_v10 = vand.u32 4294901760, %v257_v6  ;;  %v2935_v11 = vand.u32 4294901760, %v256_v7  ;;  %v2937_v12 = vand.u32 4294901760, %v255_v8  ;;  %v254_v13 = vld [vmem:[%s4592_s1 + $0x48] sm:$0xff]  ;;  %v253_v14 = vld [vmem:[%s4592_s1 + $0x40] sm:$0xff]  ;;  %v2948_v15 = vld [vmem:[%s4592_s1 + $0x38] sm:$0xff] }
  0x16   : > { %387 = vmatprep.subr.mxu0 %v2916_v3  ;;  %v2951_v16 = vand.u32 4294901760, %v254_v13  ;;  %v2953_v17 = vand.u32 4294901760, %v253_v14  ;;  %v2956_v18 = vand.u32 4294901760, %v2948_v15  ;;  %v2959_v19 = vsub.f32 %v260_v0, %v2916_v3  ;;  %v2964_v20 = vld [vmem:[%s4592_s1 + $0x30] sm:$0xff]  ;;  %v2969_v21 = vld [vmem:[%s4592_s1 + $0x28] sm:$0xff]  ;;  %v2974_v22 = vld [vmem:[%s4592_s1 + $0x20] sm:$0xff] }
  0x17   : > { %389 = vmatpush1.msra.mxu0 %v2918_v4  ;;  %v2978_v23 = vand.u32 4294901760, %v2964_v20  ;;  %v2981_v24 = vsub.f32 %v259_v1, %v2918_v4  ;;  %v2984_v25 = vand.u32 4294901760, %v2969_v21  ;;  %v2987_v26 = vsub.f32 %v258_v2, %v2920_v5  ;;  %v2992_v27 = vld [vmem:[%s4592_s1 + $0x18] sm:$0xff]  ;;  %v2997_v28 = vld [vmem:[%s4592_s1 + $0x10] sm:$0xff]  ;;  %v3002_v29 = vld [vmem:[%s4592_s1 + $0x8] sm:$0xff]  ;;  %p201_p10 = scmp.lt.s32.totalorder %s2715_s7, 63 }
  0x18   : > { %391 = vmatprep.subr.mxu0 %v2920_v5  ;;  %v4618_v30 = vand.u32 4294901760, %v2959_v19  ;;  %v3009_v31 = vand.u32 4294901760, %v2974_v22  ;;  %v3012_v32 = vsub.f32 %v257_v6, %v2933_v10  ;;  %v3015_v33 = vand.u32 4294901760, %v2992_v27  ;;  %v3029_v38 = vld [vmem:[%s4592_s1] sm:$0xff]  ;;  %s197_s8 = sand.u32 1, %s2819_s16   ;;  %s2724_s13 = sshll.u32 %s2879_s19, 12 }
  0x19   : > { %393 = vmatpush1.msra.mxu0 %v2933_v10  ;;  %v4617_v34 = vand.u32 4294901760, %v2981_v24  ;;  %v4615_v35 = vand.u32 4294901760, %v2987_v26  ;;  %v3021_v36 = vsub.f32 %v256_v7, %v2935_v11  ;;  %v3024_v37 = vand.u32 4294901760, %v2997_v28  ;;  %s4929_s7 = smov (!%p201_p10, %s2715_s7), 63  ;;  %s2714_s9 = sshll.u32 %s197_s8, 8 }
  0x1a   : > { %395 = vmatprep.subr.mxu0 %v2935_v11  ;;  %v822_v39 = vsub.f32 %v2959_v19, %v4618_v30  ;;  %v4613_v40 = vand.u32 4294901760, %v3012_v32  ;;  %v3041_v41 = vsub.f32 %v255_v8, %v2937_v12  ;;  %v3044_v42 = vand.u32 4294901760, %v3002_v29  ;;  %s2716_s27 = sshll.u32 %s4929_s7, 3  ;;  %s4384_s7 = scalar_lea.vmem [#allocation2], %s2714_s9 }
  0x1b   : > { %397 = vmatpush1.msra.mxu0 %v2937_v12  ;;  %v828_v43 = vsub.f32 %v2981_v24, %v4617_v34  ;;  %v834_v44 = vsub.f32 %v2987_v26, %v4615_v35  ;;  %v4612_v45 = vand.u32 4294901760, %v3021_v36  ;;  %v3055_v46 = vsub.f32 %v254_v13, %v2951_v16  ;;  %s3071_s30 = scalar_lea.vmem %s4591_s0, %s2716_s27  ;;  %s4377_s12 = scalar_lea.vmem %s4594_s3, %s2716_s27 }
  0x1c   : > { %399 = vmatprep.subr.mxu0 %v2951_v16  ;;  %v823_v47 = vand.u32 4294901760, %v822_v39  ;;  %v840_v48 = vsub.f32 %v3012_v32, %v4613_v40  ;;  %v4610_v49 = vand.u32 4294901760, %v3041_v41  ;;  %v3064_v50 = vand.u32 4294901760, %v3029_v38  ;;  %v213_v55 = vld [vmem:[%s3071_s30] sm:$0xff]  ;;  %v214_v0 = vld [vmem:[%s3071_s30 + $0x8] sm:$0xff]  ;;  %v223_v40 = vld [vmem:[%s3071_s30 + $0x50] sm:$0xff]  ;;  %s4542_s23 = scalar_lea.hbm %s4595_s4, %s2724_s13 }
  0x1d   : > { %401 = vmatpush1.msra.mxu0 %v2953_v17  ;;  %v829_v51 = vand.u32 4294901760, %v828_v43  ;;  %v835_v52 = vand.u32 4294901760, %v834_v44  ;;  %v846_v53 = vsub.f32 %v3021_v36, %v4612_v45  ;;  %v4605_v54 = vand.u32 4294901760, %v3055_v46  ;;  %s2623_s14 = sshll.u32 %s4384_s7, 4  ;;  %s4551_s19 = scalar_lea.sflag [#allocation3], %s197_s8  ;;  %s4544_s14 = int_to_ptr.vmem [resolvable:$true] %s2623_s14 }
  0x1e   : > { %403 = vmatprep.subr.mxu0 %v2956_v18  ;;  %824 = vmatprep.subr.mxu1 %v823_v47  ;;  %v841_v56 = vand.u32 4294901760, %v840_v48  ;;  %v852_v57 = vsub.f32 %v3041_v41, %v4610_v49  ;;  %v3084_v58 = vsub.f32 %v253_v14, %v2953_v17  ;;  %v275_v59 = vsel %vm273_vm0, %v213_v55, 0  ;;  %v222_v49 = vld [vmem:[%s3071_s30 + $0x48] sm:$0xff]  ;;  %s2767_s27 = scalar_lea.vmem %s4544_s14, 4096  ;;  %s2830_s28 = smov [#allocation2]  }
  0x1f   : > { %405 = vmatpush1.msra.mxu0 %v2978_v23  ;;  %830 = vmatpush1.msra.mxu1 %v829_v51  ;;  %v847_v60 = vand.u32 4294901760, %v846_v53  ;;  %v858_v61 = vsub.f32 %v3055_v46, %v4605_v54  ;;  %v3091_v62 = vand.u32 4294901760, %v275_v59  ;;  %v3095_v63 = vsub.f32 %v2948_v15, %v2956_v18  ;;  %p2768_p11 = scmp.ne.s32.totalorder %s4544_s14, %s2767_s27  ;;  %s2771_s29 = sshll.u32 %s2830_s28, 4  ;;  %s2772_s29 = int_to_ptr.vmem [resolvable:$false] %s2771_s29 }
  0x20   : > { %407 = vmatprep.subr.mxu0 %v2984_v25  ;;  %836 = vmatprep.subr.mxu1 %v835_v52  ;;  %v853_v1 = vand.u32 4294901760, %v852_v57  ;;  %v4602_v2 = vand.u32 4294901760, %v3084_v58  ;;  %v3102_v6 = vsub.f32 %v2964_v20, %v2978_v23  ;;  %v3106_v7 = vsub.f32 %v2969_v21, %v2984_v25  ;;  %p2774_p0 = scmp.lt.s32.totalorder %s4544_s14, %s2772_s29 }
  0x21   : > { %4721 = vst [vmem:[#allocation5_spill] sm:$0xff] %v3091_v62  ;;  %409 = vmatpush1.msra.mxu0 %v3009_v31  ;;  %842 = vmatpush1.msra.mxu1 %v841_v56  ;;  %v859_v8 = vand.u32 4294901760, %v858_v61  ;;  %v3110_v13 = vsub.f32 %v275_v59, %v3091_v62  ;;  %v4600_v14 = vand.u32 4294901760, %v3095_v63  ;;  %v3115_v15 = vsub.f32 %v2974_v22, %v3009_v31  ;;  %v215_v61 = vld [vmem:[%s3071_s30 + $0x10] sm:$0xff]  ;;  %p2769_p12 = pnand %p2768_p11, %p2896_p5 }
  0x22   : > { %411 = vmatprep.subr.mxu0 %v3015_v33  ;;  %848 = vmatprep.subr.mxu1 %v847_v60  ;;  %v864_v20 = vsub.f32 %v3084_v58, %v4602_v2  ;;  %v4599_v21 = vand.u32 4294901760, %v3102_v6  ;;  %v4598_v39 = vand.u32 4294901760, %v3106_v7  ;;  %v278_v43 = vsel %vm273_vm0, %v214_v0, 0 }
  0x23   : > { %413 = vmatpush1.msra.mxu0 %v3024_v37  ;;  %854 = vmatpush1.msra.mxu1 %v853_v1  ;;  %v4607_v22 = vand.u32 4294901760, %v3110_v13  ;;  %v870_v44 = vsub.f32 %v3095_v63, %v4600_v14  ;;  %v4596_v47 = vand.u32 4294901760, %v3115_v15  ;;  %v3130_v48 = vand.u32 4294901760, %v278_v43  ;;  %p2770_p13 = pneg %p2769_p12 }
  0x24   : > { %415 = vmatprep.subr.mxu0 %v3044_v42  ;;  %860 = vmatprep.subr.mxu1 %v859_v8  ;;  %v865_v51 = vand.u32 4294901760, %v864_v20  ;;  %v876_v52 = vsub.f32 %v3102_v6, %v4599_v21  ;;  %v882_v53 = vsub.f32 %v3106_v7, %v4598_v39  ;;  %v3141_v55 = vsub.f32 %v2992_v27, %v3015_v33  ;;  %v216_v20 = vld [vmem:[%s3071_s30 + $0x18] sm:$0xff]  ;;  %v218_v39 = vld [vmem:[%s3071_s30 + $0x28] sm:$0xff]  ;;  %v219_v21 = vld [vmem:[%s3071_s30 + $0x30] sm:$0xff] }
  0x25   : > { %4722 = vst [vmem:[#allocation6_spill] sm:$0xff] %v3130_v48  ;;  %417 = vmatpush1.msra.mxu0 %v3064_v50  ;;  %v454_v56 = vsub.f32 %v3110_v13, %v4607_v22  ;;  %v871_v57 = vand.u32 4294901760, %v870_v44  ;;  %v888_v59 = vsub.f32 %v3115_v15, %v4596_v47  ;;  %v3151_v60 = vsub.f32 %v278_v43, %v3130_v48 }
  0x26   : > { %866 = vmatpush1.msra.mxu1 %v865_v51  ;;  %v877_v0 = vand.u32 4294901760, %v876_v52  ;;  %v883_v27 = vand.u32 4294901760, %v882_v53  ;;  %v4597_v1 = vand.u32 4294901760, %v3141_v55  ;;  %v3157_v8 = vsub.f32 %v2997_v28, %v3024_v37  ;;  %1190 = vmatprep.subr.mxu0 %v2959_v19 }
  0x27   : > { %v455_v44 = vand.u32 4294901760, %v454_v56  ;;  %872 = vmatprep.subr.mxu1 %v871_v57  ;;  %v889_v47 = vand.u32 4294901760, %v888_v59  ;;  %v4603_v43 = vand.u32 4294901760, %v3151_v60  ;;  %v3164_v51 = vsub.f32 %v3002_v29, %v3044_v42  ;;  %v217_v57 = vld [vmem:[%s3071_s30 + $0x20] sm:$0xff] }
  0x28   : > { %878 = vmatpush1.msra.mxu1 %v877_v0  ;;  %v894_v52 = vsub.f32 %v3141_v55, %v4597_v1  ;;  %v4601_v28 = vand.u32 4294901760, %v3157_v8  ;;  %v3172_v53 = vsub.f32 %v3029_v38, %v3064_v50  ;;  %v281_v56 = vsel %vm273_vm0, %v215_v61, 0 }
  0x29   : > { %456 = vmatmul.mubr.f32.vlgmr.msra.gmra.mxu0 %v455_v44  ;;  %884 = vmatprep.subr.mxu1 %v883_v27  ;;  %v465_v29 = vsub.f32 %v3151_v60, %v4603_v43  ;;  %v4604_v59 = vand.u32 4294901760, %v3164_v51  ;;  %v3180_v0 = vand.u32 4294901760, %v281_v56  ;;  %v284_v1 = vsel %vm273_vm0, %v216_v20, 0 }
  0x2a   : > { %461 = vmatprep.mubr.f32.mxu0 %v2829_v9  ;;  %890 = vmatpush1.msra.mxu1 %v889_v47  ;;  %v895_v38 = vand.u32 4294901760, %v894_v52  ;;  %v900_v61 = vsub.f32 %v3157_v8, %v4601_v28  ;;  %v4606_v27 = vand.u32 4294901760, %v3172_v53  ;;  %v3188_v44 = vand.u32 4294901760, %v284_v1 }
  0x2b   : > { %4723 = vst [vmem:[#allocation7_spill] sm:$0xff] %v3180_v0  ;;  %v466_v14 = vand.u32 4294901760, %v465_v29  ;;  %v906_v20 = vsub.f32 %v3164_v51, %v4604_v59  ;;  %1193 = vmatpush1.msra.mxu0 %v2981_v24  ;;  %v3197_v47 = vsub.f32 %v281_v56, %v3180_v0  ;;  %v287_v52 = vsel %vm273_vm0, %v217_v57, 0  ;;  %v220_v59 = vld [vmem:[%s3071_s30 + $0x38] sm:$0xff] }
  0x2c   : > { %4724 = vst [vmem:[#allocation8_spill] sm:$0xff] %v3188_v44  ;;  %896 = vmatprep.subr.mxu1 %v895_v38  ;;  %v901_v28 = vand.u32 4294901760, %v900_v61  ;;  %v912_v2 = vsub.f32 %v3172_v53, %v4606_v27  ;;  %v3204_v43 = vsub.f32 %v284_v1, %v3188_v44  ;;  %v3206_v29 = vand.u32 4294901760, %v287_v52  ;;  %1196 = vmatprep.subr.mxu0 %v2987_v26 }
  0x2d   : > { %467 = vmatmul.mubr.f32.gmra.mxu0 %v466_v14  ;;  %v907_v56 = vand.u32 4294901760, %v906_v20  ;;  %v4609_v54 = vand.u32 4294901760, %v3197_v47  ;;  %v290_v57 = vsel %vm273_vm0, %v218_v39, 0  ;;  %v293_v38 = vsel %vm273_vm0, %v219_v21, 0 }
  0x2e   : > { %4725 = vst [vmem:[#allocation9_spill] sm:$0xff] %v3206_v29  ;;  %902 = vmatpush1.msra.mxu1 %v901_v28  ;;  %472 = vmatprep.mubr.f32.mxu0 %v2829_v9  ;;  %v913_v61 = vand.u32 4294901760, %v912_v2  ;;  %v4608_v1 = vand.u32 4294901760, %v3204_v43  ;;  %v3216_v27 = vsub.f32 %v287_v52, %v3206_v29  ;;  %v3218_v22 = vand.u32 4294901760, %v290_v57  ;;  %v221_v28 = vld [vmem:[%s3071_s30 + $0x40] sm:$0xff] }
  0x2f   : > { %908 = vmatprep.subr.mxu1 %v907_v56  ;;  %v476_v14 = vsub.f32 %v3197_v47, %v4609_v54  ;;  %1199 = vmatpush1.msra.mxu0 %v3012_v32  ;;  %v3224_v39 = vand.u32 4294901760, %v293_v38  ;;  %v296_v21 = vsel %vm273_vm0, %v220_v59, 0  ;;  %v305_v35 = vsel %vm273_vm0, %v223_v40, 0 }
  0x30   : > { %4726 = vst [vmem:[#allocation10_spill] sm:$0xff] %v3218_v22  ;;  %914 = vmatpush1.msra.mxu1 %v913_v61  ;;  %v487_v2 = vsub.f32 %v3204_v43, %v4608_v1  ;;  %v4611_v20 = vand.u32 4294901760, %v3216_v27  ;;  %v3233_v52 = vsub.f32 %v290_v57, %v3218_v22  ;;  %1202 = vmatprep.subr.mxu0 %v3021_v36  ;;  %v3240_v59 = vand.u32 4294901760, %v296_v21 }
  0x31   : > { %4727 = vst [vmem:[#allocation11_spill] sm:$0xff] %v3224_v39  ;;  %v477_v56 = vand.u32 4294901760, %v476_v14  ;;  %949 = vmatmul.mubr.f32.vlgmr.msra.gmra.mxu1 %v3091_v62  ;;  %1542 = vmatprep.subr.mxu1 %v2916_v3  ;;  %v299_v61 = vsel %vm273_vm0, %v221_v28, 0  ;;  %v3248_v54 = vsub.f32 %v293_v38, %v3224_v39 }
  0x32   : > { %1544 = vmatpush1.msra.mxu1 %v2918_v4  ;;  %954 = vmatprep.mubr.f32.mxu1 %v2829_v9  ;;  %4728 = vst [vmem:[#allocation12_spill] sm:$0xff] %v3240_v59  ;;  %v488_v1 = vand.u32 4294901760, %v487_v2  ;;  %v498_v57 = vsub.f32 %v3216_v27, %v4611_v20  ;;  %v4614_v14 = vand.u32 4294901760, %v3233_v52  ;;  %v3257_v28 = vand.u32 4294901760, %v299_v61 }
  0x33   : > { %478 = vmatmul.mubr.f32.gmra.mxu0 %v477_v56  ;;  %1546 = vmatprep.subr.mxu1 %v2920_v5  ;;  %v302_v2 = vsel %vm273_vm0, %v222_v49, 0  ;;  %v4616_v20 = vand.u32 4294901760, %v3248_v54  ;;  %v3266_v45 = vsub.f32 %v296_v21, %v3240_v59 }
  0x34   : > { %483 = vmatprep.mubr.f32.mxu0 %v2829_v9  ;;  %1548 = vmatpush1.msra.mxu1 %v2933_v10  ;;  %4729 = vst [vmem:[#allocation13_spill] sm:$0xff] %v3257_v28  ;;  %v499_v38 = vand.u32 4294901760, %v498_v57  ;;  %v509_v56 = vsub.f32 %v3233_v52, %v4614_v14  ;;  %v3276_v49 = vsub.f32 %v299_v61, %v3257_v28  ;;  %v224_v61 = vld [vmem:[%s3071_s30 + $0x58] sm:$0xff] }
  0x35   : > { %956 = vmatmul.mubr.f32.gmra.mxu1 %v3130_v48  ;;  %1205 = vmatpush1.msra.mxu0 %v3041_v41  ;;  %v520_v57 = vsub.f32 %v3248_v54, %v4616_v20  ;;  %v4619_v14 = vand.u32 4294901760, %v3266_v45  ;;  %v308_v30 = vsel %vm273_vm0, %v224_v61, 0 }
  0x36   : > { %961 = vmatprep.mubr.f32.mxu1 %v2829_v9  ;;  %1550 = vmatprep.subr.mxu1 %v2935_v11  ;;  %v510_v21 = vand.u32 4294901760, %v509_v56  ;;  %v4622_v20 = vand.u32 4294901760, %v3276_v49 }
  0x37   : > { %489 = vmatmul.mubr.f32.gmra.mxu0 %v488_v1  ;;  %1552 = vmatpush1.msra.mxu1 %v2937_v12  ;;  %v3278_v1 = vand.u32 4294901760, %v302_v2  ;;  %v521_v40 = vand.u32 4294901760, %v520_v57  ;;  %v531_v56 = vsub.f32 %v3266_v45, %v4619_v14 }
  0x38   : > { %494 = vmatprep.mubr.f32.mxu0 %v2829_v9  ;;  %1208 = vmatprep.subr.mxu0 %v3055_v46  ;;  %v542_v61 = vsub.f32 %v3276_v49, %v4622_v20 }
  0x39   : > { %963 = vmatmul.mubr.f32.gmra.mxu1 %v3180_v0  ;;  %1211 = vmatpush1.msra.mxu0 %v3084_v58  ;;  %4730 = vst [vmem:[#allocation14_spill] sm:$0xff] %v3278_v1  ;;  %v3301_v34 = vsub.f32 %v302_v2, %v3278_v1  ;;  %v532_v2 = vand.u32 4294901760, %v531_v56 }
  0x3a   : > { %968 = vmatprep.mubr.f32.mxu1 %v2829_v9  ;;  %1554 = vmatprep.subr.mxu1 %v2951_v16  ;;  %v543_v20 = vand.u32 4294901760, %v542_v61 }
  0x3b   : > { %500 = vmatmul.mubr.f32.gmra.mxu0 %v499_v38  ;;  %1556 = vmatpush1.msra.mxu1 %v2953_v17  ;;  %v3293_v38 = vand.u32 4294901760, %v305_v35  ;;  %v4629_v14 = vand.u32 4294901760, %v3301_v34 }
  0x3c   : > { %505 = vmatprep.mubr.f32.mxu0 %v2829_v9  ;;  %1214 = vmatprep.subr.mxu0 %v3095_v63 }
  0x3d   : > { %970 = vmatmul.mubr.f32.gmra.mxu1 %v3188_v44  ;;  %1217 = vmatpush1.msra.mxu0 %v3102_v6  ;;  %4731 = vst [vmem:[#allocation15_spill] sm:$0xff] %v3293_v38  ;;  %v3312_v57 = vsub.f32 %v305_v35, %v3293_v38  ;;  %v553_v44 = vsub.f32 %v3301_v34, %v4629_v14 }
  0x3e   : > { %975 = vmatprep.mubr.f32.mxu1 %v2829_v9  ;;  %1558 = vmatprep.subr.mxu1 %v2956_v18 }
  0x3f   : > { %511 = vmatmul.mubr.f32.gmra.mxu0 %v510_v21  ;;  %1560 = vmatpush1.msra.mxu1 %v2978_v23  ;;  %v225_v21 = vld [vmem:[%s3071_s30 + $0x60] sm:$0xff]  ;;  %v554_v14 = vand.u32 4294901760, %v553_v44 }
  0x40   : > { %516 = vmatprep.mubr.f32.mxu0 %v2829_v9  ;;  %1220 = vmatprep.subr.mxu0 %v3106_v7  ;;  %v311_v35 = vsel %vm273_vm0, %v225_v21, 0 }
  0x41   : > { %977 = vmatmul.mubr.f32.gmra.mxu1 %v3206_v29  ;;  %1223 = vmatpush1.msra.mxu0 %v3115_v15  ;;  %v3319_v29 = vand.u32 4294901760, %v308_v30  ;;  %v3337_v0 = vand.u32 4294901760, %v311_v35 }
  0x42   : > { %982 = vmatprep.mubr.f32.mxu1 %v2829_v9  ;;  %1562 = vmatprep.subr.mxu1 %v2984_v25 }
  0x43   : > { %522 = vmatmul.mubr.f32.gmra.mxu0 %v521_v40  ;;  %4732 = vst [vmem:[#allocation16_spill] sm:$0xff] %v3319_v29  ;;  %1564 = vmatpush1.msra.mxu1 %v3009_v31  ;;  %v226_v40 = vld [vmem:[%s3071_s30 + $0x68] sm:$0xff]  ;;  %v3335_v21 = vsub.f32 %v308_v30, %v3319_v29  ;;  %4734 = vst [vmem:[#allocation18_spill] sm:$0xff] %v3337_v0  ;;  %v4735_v30 = vand.u32 4294901760, %v3312_v57  ;;  %v3354_v48 = vsub.f32 %v311_v35, %v3337_v0 }
  0x44   : > { %527 = vmatprep.mubr.f32.mxu0 %v2829_v9  ;;  %1226 = vmatprep.subr.mxu0 %v3141_v55  ;;  %v314_v56 = vsel %vm273_vm0, %v226_v40, 0 }
  0x45   : > { %984 = vmatmul.mubr.f32.gmra.mxu1 %v3218_v22  ;;  %1229 = vmatpush1.msra.mxu0 %v3157_v8  ;;  %4733 = vst [vmem:[#allocation17_spill] sm:$0xff] %v3335_v21  ;;  %v227_v22 = vld [vmem:[%s3071_s30 + $0x70] sm:$0xff]  ;;  %v4636_v40 = vand.u32 4294901760, %v3335_v21  ;;  %4736 = vst [vmem:[#allocation19_spill] sm:$0xff] %v3354_v48  ;;  %v4641_v62 = vand.u32 4294901760, %v3354_v48 }
  0x46   : > { %989 = vmatprep.mubr.f32.mxu1 %v2829_v9  ;;  %1566 = vmatprep.subr.mxu1 %v3015_v33  ;;  %v317_v61 = vsel %vm273_vm0, %v227_v22, 0  ;;  %v228_v22 = vld [vmem:[%s3071_s30 + $0x78] sm:$0xff] }
  0x47   : > { %533 = vmatmul.mubr.f32.gmra.mxu0 %v532_v2  ;;  %1568 = vmatpush1.msra.mxu1 %v3024_v37  ;;  %v564_v2 = vsub.f32 %v3312_v57, %v4735_v30  ;;  %v4738_v30 = vand.u32 4294901760, %v2959_v19  ;;  %v3366_v44 = vand.u32 4294901760, %v317_v61  ;;  %v575_v35 = vsub.f32 %v3335_v21, %v4636_v40 }
  0x48   : > { %538 = vmatprep.mubr.f32.mxu0 %v2829_v9  ;;  %1232 = vmatprep.subr.mxu0 %v3164_v51 }
  0x49   : > { %991 = vmatmul.mubr.f32.gmra.mxu1 %v3224_v39  ;;  %1235 = vmatpush1.msra.mxu0 %v3172_v53  ;;  %v3356_v39 = vand.u32 4294901760, %v314_v56  ;;  %4739 = vst [vmem:[#allocation21_spill] sm:$0xff] %v3366_v44  ;;  %v576_v40 = vand.u32 4294901760, %v575_v35 }
  0x4a   : > { %996 = vmatprep.mubr.f32.mxu1 %v2829_v9  ;;  %1570 = vmatprep.subr.mxu1 %v3044_v42 }
  0x4b   : > { %544 = vmatmul.mubr.f32.gmra.mxu0 %v543_v20  ;;  %4737 = vst [vmem:[#allocation20_spill] sm:$0xff] %v3356_v39  ;;  %1572 = vmatpush1.msra.mxu1 %v3064_v50  ;;  %v565_v20 = vand.u32 4294901760, %v564_v2  ;;  %v3373_v19 = vsub.f32 %v314_v56, %v3356_v39  ;;  %v586_v56 = vsub.f32 %v3354_v48, %v4641_v62 }
  0x4c   : > { %549 = vmatprep.mubr.f32.mxu0 %v2829_v9  ;;  %1913 = vmatprep.subr.mxu0 %v4738_v30  ;;  %v229_v30 = vld [vmem:[%s3071_s30 + $0x80] sm:$0xff] }
  0x4d   : > { %998 = vmatmul.mubr.f32.gmra.mxu1 %v3240_v59  ;;  %2248 = vmatprep.subr.mxu1 %v2916_v3  ;;  %4740 = vst [vmem:[#allocation22_spill] sm:$0xff] %v3373_v19  ;;  %v320_v3 = vsel %vm273_vm0, %v228_v22, 0  ;;  %v323_v2 = vsel %vm273_vm0, %v229_v30, 0  ;;  %v4646_v59 = vand.u32 4294901760, %v3373_v19  ;;  %v230_v22 = vld [vmem:[%s3071_s30 + $0x88] sm:$0xff]  ;;  %v587_v35 = vand.u32 4294901760, %v586_v56 }
  0x4e   : > { %1003 = vmatprep.mubr.f32.mxu1 %v2829_v9  ;;  %v3388_v21 = vand.u32 4294901760, %v320_v3 }
  0x4f   : > { %555 = vmatmul.mubr.f32.gmra.mxu0 %v554_v14  ;;  %v3381_v14 = vsub.f32 %v317_v61, %v3366_v44  ;;  %v3394_v61 = vand.u32 4294901760, %v323_v2  ;;  %v597_v30 = vsub.f32 %v3373_v19, %v4646_v59  ;;  %v232_v19 = vld [vmem:[%s3071_s30 + $0x98] sm:$0xff] }
  0x50   : > { %560 = vmatprep.mubr.f32.mxu0 %v2829_v9  ;;  %4742 = vst [vmem:[#allocation24_spill] sm:$0xff] %v3388_v21 }
  0x51   : > { %1005 = vmatmul.mubr.f32.gmra.mxu1 %v3257_v28  ;;  %4741 = vst [vmem:[#allocation23_spill] sm:$0xff] %v3381_v14  ;;  %4743 = vst [vmem:[#allocation25_spill] sm:$0xff] %v3394_v61  ;;  %v4651_v62 = vand.u32 4294901760, %v3381_v14  ;;  %v3402_v28 = vsub.f32 %v320_v3, %v3388_v21  ;;  %v3415_v3 = vsub.f32 %v323_v2, %v3394_v61 }
  0x52   : > { %1010 = vmatprep.mubr.f32.mxu1 %v2829_v9 }
  0x53   : > { %566 = vmatmul.mubr.f32.gmra.mxu0 %v565_v20  ;;  %v326_v20 = vsel %vm273_vm0, %v230_v22, 0  ;;  %4744 = vst [vmem:[#allocation26_spill] sm:$0xff] %v3402_v28  ;;  %v608_v56 = vsub.f32 %v3381_v14, %v4651_v62  ;;  %v4656_v59 = vand.u32 4294901760, %v3402_v28  ;;  %4746 = vst [vmem:[#allocation28_spill] sm:$0xff] %v3415_v3  ;;  %v4661_v2 = vand.u32 4294901760, %v3415_v3 }
  0x54   : > { %571 = vmatprep.mubr.f32.mxu0 %v2829_v9  ;;  %v3408_v22 = vand.u32 4294901760, %v326_v20 }
  0x55   : > { %1012 = vmatmul.mubr.f32.gmra.mxu1 %v3278_v1  ;;  %v231_v1 = vld [vmem:[%s3071_s30 + $0x90] sm:$0xff]  ;;  %v619_v62 = vsub.f32 %v3402_v28, %v4656_v59 }
  0x56   : > { %1017 = vmatprep.mubr.f32.mxu1 %v2829_v9  ;;  %4745 = vst [vmem:[#allocation27_spill] sm:$0xff] %v3408_v22 }
  0x57   : > { %577 = vmatmul.mubr.f32.gmra.mxu0 %v576_v40  ;;  %v598_v40 = vand.u32 4294901760, %v597_v30  ;;  %v609_v30 = vand.u32 4294901760, %v608_v56  ;;  %v630_v56 = vsub.f32 %v3415_v3, %v4661_v2 }
  0x58   : > { %582 = vmatprep.mubr.f32.mxu0 %v2829_v9 }
  0x59   : > { %1019 = vmatmul.mubr.f32.gmra.mxu1 %v3293_v38  ;;  %v329_v38 = vsel %vm273_vm0, %v231_v1, 0  ;;  %v332_v1 = vsel %vm273_vm0, %v232_v19, 0 }
  0x5a   : > { %1024 = vmatprep.mubr.f32.mxu1 %v2829_v9  ;;  %v3429_v14 = vand.u32 4294901760, %v329_v38  ;;  %v3443_v28 = vand.u32 4294901760, %v332_v1 }
  0x5b   : > { %588 = vmatmul.mubr.f32.gmra.mxu0 %v587_v35  ;;  %v3423_v35 = vsub.f32 %v326_v20, %v3408_v22 }
  0x5c   : > { %593 = vmatprep.mubr.f32.mxu0 %v2829_v9  ;;  %4748 = vst [vmem:[#allocation30_spill] sm:$0xff] %v3429_v14  ;;  %v3441_v59 = vsub.f32 %v329_v38, %v3429_v14  ;;  %4750 = vst [vmem:[#allocation32_spill] sm:$0xff] %v3443_v28  ;;  %v3455_v2 = vsub.f32 %v332_v1, %v3443_v28 }
  0x5d   : > { %1026 = vmatmul.mubr.f32.gmra.mxu1 %v3319_v29  ;;  %4747 = vst [vmem:[#allocation29_spill] sm:$0xff] %v3423_v35  ;;  %v233_v29 = vld [vmem:[%s3071_s30 + $0xa0] sm:$0xff]  ;;  %v4666_v20 = vand.u32 4294901760, %v3423_v35 }
  0x5e   : > { %1031 = vmatprep.mubr.f32.mxu1 %v2829_v9  ;;  %4749 = vst [vmem:[#allocation31_spill] sm:$0xff] %v3441_v59  ;;  %v335_v19 = vsel %vm273_vm0, %v233_v29, 0  ;;  %v4671_v38 = vand.u32 4294901760, %v3441_v59  ;;  %4751 = vst [vmem:[#allocation33_spill] sm:$0xff] %v3455_v2  ;;  %v235_v29 = vld [vmem:[%s3071_s30 + $0xb0] sm:$0xff] }
  0x5f   : > { %599 = vmatmul.mubr.f32.gmra.mxu0 %v598_v40  ;;  %v620_v40 = vand.u32 4294901760, %v619_v62  ;;  %v641_v62 = vsub.f32 %v3423_v35, %v4666_v20  ;;  %v3457_v3 = vand.u32 4294901760, %v335_v19 }
  0x60   : > { %604 = vmatprep.mubr.f32.mxu0 %v2829_v9  ;;  %v652_v1 = vsub.f32 %v3441_v59, %v4671_v38  ;;  %v237_v59 = vld [vmem:[%s3071_s30 + $0xc0] sm:$0xff] }
  0x61   : > { %1033 = vmatmul.mubr.f32.gmra.mxu1 %v3337_v0  ;;  %v234_v0 = vld [vmem:[%s3071_s30 + $0xa8] sm:$0xff]  ;;  %4752 = vst [vmem:[#allocation34_spill] sm:$0xff] %v3457_v3  ;;  %v642_v20 = vand.u32 4294901760, %v641_v62  ;;  %v3470_v35 = vsub.f32 %v335_v19, %v3457_v3 }
  0x62   : > { %1038 = vmatprep.mubr.f32.mxu1 %v2829_v9 }
  0x63   : > { %610 = vmatmul.mubr.f32.gmra.mxu0 %v609_v30  ;;  %v631_v30 = vand.u32 4294901760, %v630_v56  ;;  %v4676_v56 = vand.u32 4294901760, %v3455_v2  ;;  %4753 = vst [vmem:[#allocation35_spill] sm:$0xff] %v3470_v35  ;;  %v4681_v38 = vand.u32 4294901760, %v3470_v35 }
  0x64   : > { %615 = vmatprep.mubr.f32.mxu0 %v2829_v9 }
  0x65   : > { %1040 = vmatmul.mubr.f32.gmra.mxu1 %v3356_v39  ;;  %v338_v39 = vsel %vm273_vm0, %v234_v0, 0  ;;  %v236_v0 = vld [vmem:[%s3071_s30 + $0xb8] sm:$0xff]  ;;  %v663_v19 = vsub.f32 %v3455_v2, %v4676_v56  ;;  %v674_v56 = vsub.f32 %v3470_v35, %v4681_v38  ;;  %v238_v2 = vld [vmem:[%s3071_s30 + $0xc8] sm:$0xff] }
  0x66   : > { %1045 = vmatprep.mubr.f32.mxu1 %v2829_v9  ;;  %v3472_v48 = vand.u32 4294901760, %v338_v39 }
  0x67   : > { %621 = vmatmul.mubr.f32.gmra.mxu0 %v620_v40  ;;  %v341_v40 = vsel %vm273_vm0, %v235_v29, 0  ;;  %v653_v29 = vand.u32 4294901760, %v652_v1  ;;  %v664_v1 = vand.u32 4294901760, %v663_v19  ;;  %v675_v19 = vand.u32 4294901760, %v674_v56 }
  0x68   : > { %626 = vmatprep.mubr.f32.mxu0 %v2829_v9  ;;  %4754 = vst [vmem:[#allocation36_spill] sm:$0xff] %v3472_v48  ;;  %v3478_v62 = vand.u32 4294901760, %v341_v40 }
  0x69   : > { %1047 = vmatmul.mubr.f32.gmra.mxu1 %v3366_v44  ;;  %v3486_v44 = vsub.f32 %v338_v39, %v3472_v48 }
  0x6a   : > { %1052 = vmatprep.mubr.f32.mxu1 %v2829_v9  ;;  %4755 = vst [vmem:[#allocation37_spill] sm:$0xff] %v3478_v62 }
  0x6b   : > { %632 = vmatmul.mubr.f32.gmra.mxu0 %v631_v30  ;;  %v344_v30 = vsel %vm273_vm0, %v236_v0, 0  ;;  %4756 = vst [vmem:[#allocation38_spill] sm:$0xff] %v3486_v44  ;;  %v4686_v39 = vand.u32 4294901760, %v3486_v44 }
  0x6c   : > { %637 = vmatprep.mubr.f32.mxu0 %v2829_v9  ;;  %v3492_v0 = vand.u32 4294901760, %v344_v30 }
  0x6d   : > { %1054 = vmatmul.mubr.f32.gmra.mxu1 %v3388_v21  ;;  %v3500_v21 = vsub.f32 %v341_v40, %v3478_v62  ;;  %v685_v38 = vsub.f32 %v3486_v44, %v4686_v39  ;;  %v240_v44 = vld [vmem:[%s3071_s30 + $0xd8] sm:$0xff] }
  0x6e   : > { %1059 = vmatprep.mubr.f32.mxu1 %v2829_v9  ;;  %4757 = vst [vmem:[#allocation39_spill] sm:$0xff] %v3492_v0 }
  0x6f   : > { %643 = vmatmul.mubr.f32.gmra.mxu0 %v642_v20  ;;  %v347_v20 = vsel %vm273_vm0, %v237_v59, 0  ;;  %4758 = vst [vmem:[#allocation40_spill] sm:$0xff] %v3500_v21  ;;  %v4691_v40 = vand.u32 4294901760, %v3500_v21  ;;  %v686_v56 = vand.u32 4294901760, %v685_v38 }
  0x70   : > { %648 = vmatprep.mubr.f32.mxu0 %v2829_v9  ;;  %v3506_v59 = vand.u32 4294901760, %v347_v20 }
  0x71   : > { %1061 = vmatmul.mubr.f32.gmra.mxu1 %v3394_v61  ;;  %v3514_v61 = vsub.f32 %v344_v30, %v3492_v0 }
  0x72   : > { %1066 = vmatprep.mubr.f32.mxu1 %v2829_v9  ;;  %v3527_v30 = vsub.f32 %v347_v20, %v3506_v59 }
  0x73   : > { %654 = vmatmul.mubr.f32.gmra.mxu0 %v653_v29  ;;  %v350_v29 = vsel %vm273_vm0, %v238_v2, 0  ;;  %4759 = vst [vmem:[#allocation41_spill] sm:$0xff] %v3514_v61  ;;  %v4696_v39 = vand.u32 4294901760, %v3514_v61 }
  0x74   : > { %659 = vmatprep.mubr.f32.mxu0 %v2829_v9  ;;  %v3520_v2 = vand.u32 4294901760, %v350_v29  ;;  %4760 = vst [vmem:[#allocation42_spill] sm:$0xff] %v3527_v30  ;;  %v4701_v20 = vand.u32 4294901760, %v3527_v30 }
  0x75   : > { %1068 = vmatmul.mubr.f32.gmra.mxu1 %v3408_v22  ;;  %v239_v22 = vld [vmem:[%s3071_s30 + $0xd0] sm:$0xff] }
  0x76   : > { %1073 = vmatprep.mubr.f32.mxu1 %v2829_v9  ;;  %v3535_v38 = vsub.f32 %v350_v29, %v3520_v2 }
  0x77   : > { %665 = vmatmul.mubr.f32.gmra.mxu0 %v664_v1  ;;  %v696_v1 = vsub.f32 %v3500_v21, %v4691_v40  ;;  %v707_v40 = vsub.f32 %v3514_v61, %v4696_v39 }
  0x78   : > { %670 = vmatprep.mubr.f32.mxu0 %v2829_v9  ;;  %4761 = vst [vmem:[#allocation43_spill] sm:$0xff] %v3535_v38  ;;  %v4706_v29 = vand.u32 4294901760, %v3535_v38 }
  0x79   : > { %1075 = vmatmul.mubr.f32.gmra.mxu1 %v3429_v14  ;;  %v353_v14 = vsel %vm273_vm0, %v239_v22, 0  ;;  %v356_v22 = vsel %vm273_vm0, %v240_v44, 0 }
  0x7a   : > { %1080 = vmatprep.mubr.f32.mxu1 %v2829_v9  ;;  %v3541_v21 = vand.u32 4294901760, %v353_v14  ;;  %v3555_v61 = vand.u32 4294901760, %v356_v22 }
  0x7b   : > { %676 = vmatmul.mubr.f32.gmra.mxu0 %v675_v19  ;;  %v697_v19 = vand.u32 4294901760, %v696_v1  ;;  %v718_v1 = vsub.f32 %v3527_v30, %v4701_v20 }
  0x7c   : > { %681 = vmatprep.mubr.f32.mxu0 %v2829_v9  ;;  %v3553_v39 = vsub.f32 %v353_v14, %v3541_v21  ;;  %v3567_v20 = vsub.f32 %v356_v22, %v3555_v61 }
  0x7d   : > { %1082 = vmatmul.mubr.f32.gmra.mxu1 %v3443_v28  ;;  %v241_v28 = vld [vmem:[%s3071_s30 + $0xe0] sm:$0xff] }
  0x7e   : > { %1087 = vmatprep.mubr.f32.mxu1 %v2829_v9  ;;  %v359_v44 = vsel %vm273_vm0, %v241_v28, 0  ;;  %v4711_v14 = vand.u32 4294901760, %v3553_v39  ;;  %v243_v28 = vld [vmem:[%s3071_s30 + $0xf0] sm:$0xff] }
  0x7f   : > { %687 = vmatmul.mubr.f32.gmra.mxu0 %v686_v56  ;;  %v708_v56 = vand.u32 4294901760, %v707_v40  ;;  %v729_v40 = vsub.f32 %v3535_v38, %v4706_v29  ;;  %v3569_v30 = vand.u32 4294901760, %v359_v44 }
  0x80   : > { %692 = vmatprep.mubr.f32.mxu0 %v2829_v9  ;;  %v740_v22 = vsub.f32 %v3553_v39, %v4711_v14 }
  0x81   : > { %1089 = vmatmul.mubr.f32.gmra.mxu1 %v3457_v3  ;;  %v242_v3 = vld [vmem:[%s3071_s30 + $0xe8] sm:$0xff]  ;;  %v730_v29 = vand.u32 4294901760, %v729_v40  ;;  %v3582_v38 = vsub.f32 %v359_v44, %v3569_v30 }
  0x82   : > { %1094 = vmatprep.mubr.f32.mxu1 %v2829_v9 }
  0x83   : > { %698 = vmatmul.mubr.f32.gmra.mxu0 %v697_v19  ;;  %v719_v19 = vand.u32 4294901760, %v718_v1  ;;  %v4716_v1 = vand.u32 4294901760, %v3567_v20  ;;  %v4717_v14 = vand.u32 4294901760, %v3582_v38 }
  0x84   : > { %703 = vmatprep.mubr.f32.mxu0 %v2829_v9 }
  0x85   : > { %1096 = vmatmul.mubr.f32.gmra.mxu1 %v3472_v48  ;;  %v362_v48 = vsel %vm273_vm0, %v242_v3, 0  ;;  %v244_v3 = vld [vmem:[%s3071_s30 + $0xf8] sm:$0xff]  ;;  %v751_v44 = vsub.f32 %v3567_v20, %v4716_v1  ;;  %s2773_s30 = scalar_lea.vmem %s2772_s29, 8192 }
  0x86   : > { %1101 = vmatprep.mubr.f32.mxu1 %v2829_v9  ;;  %v3584_v35 = vand.u32 4294901760, %v362_v48  ;;  %p2775_p1 = scmp.lt.s32.totalorder %s2773_s30, %s2767_s27 }
  0x87   : > { %709 = vmatmul.mubr.f32.gmra.mxu0 %v708_v56  ;;  %v365_v56 = vsel %vm273_vm0, %v243_v28, 0  ;;  %v741_v28 = vand.u32 4294901760, %v740_v22  ;;  %v762_v22 = vsub.f32 %v3582_v38, %v4717_v14 }
  0x88   : > { %714 = vmatprep.mubr.f32.mxu0 %v2829_v9  ;;  %v3590_v40 = vand.u32 4294901760, %v365_v56  ;;  %p2776_p2 = por %p2775_p1, %p2774_p0 }
  0x89   : > { %1103 = vmatmul.mubr.f32.gmra.mxu1 %v3478_v62  ;;  %v3598_v62 = vsub.f32 %v362_v48, %v3584_v35  ;;  %v763_v48 = vand.u32 4294901760, %v762_v22 }
  0x8a   : > { %1108 = vmatprep.mubr.f32.mxu1 %v2829_v9  ;;  %v3610_v1 = vsub.f32 %v365_v56, %v3590_v40  ;;  %p2777_p3 = pnand %p2776_p2, %p2770_p13 }
  0x8b   : > { %720 = vmatmul.mubr.f32.gmra.mxu0 %v719_v19  ;;  %v368_v19 = vsel %vm273_vm0, %v244_v3, 0  ;;  %v4718_v3 = vand.u32 4294901760, %v3598_v62 }
  0x8c   : > { %725 = vmatprep.mubr.f32.mxu0 %v2829_v9 }
  0x8d   : > { %1110 = vmatmul.mubr.f32.gmra.mxu1 %v3492_v0  ;;  %v3603_v0 = vand.u32 4294901760, %v368_v19 }
  0x8e   : > { %1115 = vmatprep.mubr.f32.mxu1 %v2829_v9 }
  0x8f   : > { %731 = vmatmul.mubr.f32.gmra.mxu0 %v730_v29  ;;  %v752_v29 = vand.u32 4294901760, %v751_v44  ;;  %v783_v44 = vand.u32 4294901760, %v3610_v1  ;;  %v3620_v14 = vsub.f32 %v368_v19, %v3603_v0 }
  0x90   : > { %736 = vmatprep.mubr.f32.mxu0 %v2829_v9 }
  0x91   : > { %1117 = vmatmul.mubr.f32.gmra.mxu1 %v3506_v59  ;;  %v794_v22 = vand.u32 4294901760, %v3620_v14 }
  0x92   : > { %1122 = vmatprep.mubr.f32.mxu1 %v2829_v9 }
  0x93   : > { %742 = vmatmul.mubr.f32.gmra.mxu0 %v741_v28  ;;  %v773_v28 = vsub.f32 %v3598_v62, %v4718_v3  ;;  %v795_v3 = vsub.f32 %v3620_v14, %v794_v22 }
  0x94   : > { %747 = vmatprep.mubr.f32.mxu0 %v2829_v9 }
  0x95   : > { %1124 = vmatmul.mubr.f32.gmra.mxu1 %v3520_v2  ;;  %v774_v56 = vand.u32 4294901760, %v773_v28  ;;  %v4762_v28 = vand.u32 4294901760, %v2981_v24  ;;  %v4766_v24 = vand.u32 4294901760, %v3041_v41  ;;  %v4781_v41 = vand.u32 4294901760, %v3164_v51 }
  0x96   : > { %1129 = vmatprep.mubr.f32.mxu1 %v2829_v9 }
  0x97   : > { %753 = vmatmul.mubr.f32.gmra.mxu0 %v752_v29  ;;  %v784_v29 = vsub.f32 %v3610_v1, %v783_v44 }
  0x98   : > { %758 = vmatprep.mubr.f32.mxu0 %v2829_v9 }
  0x99   : > { %1131 = vmatmul.mubr.f32.gmra.mxu1 %v3541_v21  ;;  %v785_v19 = vand.u32 4294901760, %v784_v29  ;;  %v4765_v29 = vand.u32 4294901760, %v3021_v36  ;;  %v4778_v36 = vand.u32 4294901760, %v3141_v55 }
  0x9a   : > { %1136 = vmatprep.mubr.f32.mxu1 %v2829_v9 }
  0x9b   : > { %764 = vmatmul.mubr.f32.gmra.mxu0 %v763_v48  ;;  %v796_v48 = vand.u32 4294901760, %v795_v3  ;;  %v4763_v3 = vand.u32 4294901760, %v2987_v26  ;;  %v4768_v26 = vand.u32 4294901760, %v3055_v46  ;;  %v4786_v46 = vand.u32 4294901760, %v3301_v34 }
  0x9c   : > { %769 = vmatprep.mubr.f32.mxu0 %v2829_v9 }
  0x9d   : > { %1138 = vmatmul.mubr.f32.gmra.mxu1 %v3555_v61 }
  0x9e   : > { %1143 = vmatprep.mubr.f32.mxu1 %v2829_v9 }
  0x9f   : > { %775 = vmatmul.mubr.f32.gmra.mxu0 %v774_v56  ;;  %v4764_v56 = vand.u32 4294901760, %v3012_v32  ;;  %v4769_v32 = vand.u32 4294901760, %v3151_v60 }
  0xa0   : > { %780 = vmatprep.mubr.f32.mxu0 %v2829_v9 }
  0xa1   : > { %1145 = vmatmul.mubr.f32.gmra.mxu1 %v3569_v30 }
  0xa2   : > { %1150 = vmatprep.mubr.f32.mxu1 %v2829_v9 }
  0xa3   : > { %786 = vmatmul.mubr.f32.gmra.mxu0 %v785_v19  ;;  %v4767_v19 = vand.u32 4294901760, %v3110_v13 }
  0xa4   : > { %791 = vmatprep.mubr.f32.mxu0 %v2829_v9 }
  0xa5   : > { %1152 = vmatmul.mubr.f32.gmra.mxu1 %v3584_v35 }
  0xa6   : > { %1157 = vmatprep.mubr.f32.mxu1 %v2829_v9 }
  0xa7   : > { %797 = vmatmul.mubr.f32.gmra.mxu0 %v796_v48 }
  0xa8   : > { %1268 = vmatprep.mubr.f32.mxu0 %v2829_v9 }
  0xa9   : > { %1159 = vmatmul.mubr.f32.gmra.mxu1 %v3590_v40 }
  0xaa   : > { %1164 = vmatprep.mubr.f32.mxu1 %v2829_v9 }
  0xab   : > { %1271 = vmatmul.mubr.f32.vlgmr.msra.gmra.mxu0 %v3110_v13  ;;  %v4793_v13 = vld [vmem:[#allocation23_spill] sm:$0xff] }
  0xac   : > { %1276 = vmatprep.mubr.f32.mxu0 %v2829_v9  ;;  %1917 = vmatpush1.msra.mxu0 %v4762_v28  ;;  %v4796_v51 = vand.u32 4294901760, %v4793_v13 }
  0xad   : > { %1166 = vmatmul.mubr.f32.gmra.mxu1 %v3603_v0  ;;  %1921 = vmatprep.subr.mxu0 %v4763_v3  ;;  %v4799_v3 = vld [vmem:[#allocation29_spill] sm:$0xff] }
  0xae   : > { %1605 = vmatprep.mubr.f32.mxu1 %v2829_v9  ;;  %1925 = vmatpush1.msra.mxu0 %v4764_v56 }
  0xaf   : > { %1279 = vmatmul.mubr.f32.gmra.mxu0 %v3151_v60  ;;  %1929 = vmatprep.subr.mxu0 %v4765_v29  ;;  %v4795_v60 = vld [vmem:[#allocation26_spill] sm:$0xff] }
  0xb0   : > { %1284 = vmatprep.mubr.f32.mxu0 %v2829_v9  ;;  %1933 = vmatpush1.msra.mxu0 %v4766_v24 }
  0xb1   : > { %1609 = vmatmul.mubr.f32.vlgmr.msra.gmra.mxu1 %v4767_v19  ;;  %1937 = vmatprep.subr.mxu0 %v4768_v26 }
  0xb2   : > { %2250 = vmatpush1.msra.mxu1 %v2918_v4  ;;  %1614 = vmatprep.mubr.f32.mxu1 %v2829_v9  ;;  %v4770_v4 = vand.u32 4294901760, %v3084_v58 }
  0xb3   : > { %1287 = vmatmul.mubr.f32.gmra.mxu0 %v3197_v47  ;;  %2252 = vmatprep.subr.mxu1 %v2920_v5  ;;  %v4771_v5 = vand.u32 4294901760, %v3197_v47  ;;  %v4797_v47 = vld [vmem:[#allocation28_spill] sm:$0xff] }
  0xb4   : > { %1292 = vmatprep.mubr.f32.mxu0 %v2829_v9  ;;  %2254 = vmatpush1.msra.mxu1 %v2933_v10  ;;  %v4772_v10 = vand.u32 4294901760, %v3095_v63  ;;  %v4791_v63 = vld [vmem:[#allocation22_spill] sm:$0xff]  ;;  %v4800_v24 = vand.u32 4294901760, %v4797_v47 }
  0xb5   : > { %1618 = vmatmul.mubr.f32.gmra.mxu1 %v4769_v32  ;;  %2256 = vmatprep.subr.mxu1 %v2935_v11  ;;  %v4773_v11 = vand.u32 4294901760, %v3102_v6 }
  0xb6   : > { %1623 = vmatprep.mubr.f32.mxu1 %v2829_v9  ;;  %2258 = vmatpush1.msra.mxu1 %v2937_v12  ;;  %v4774_v12 = vand.u32 4294901760, %v3204_v43 }
  0xb7   : > { %1295 = vmatmul.mubr.f32.gmra.mxu0 %v3204_v43  ;;  %2260 = vmatprep.subr.mxu1 %v2951_v16  ;;  %v4775_v16 = vand.u32 4294901760, %v3106_v7 }
  0xb8   : > { %1300 = vmatprep.mubr.f32.mxu0 %v2829_v9  ;;  %1941 = vmatpush1.msra.mxu0 %v4770_v4 }
  0xb9   : > { %1627 = vmatmul.mubr.f32.gmra.mxu1 %v4771_v5  ;;  %1945 = vmatprep.subr.mxu0 %v4772_v10  ;;  %v4801_v5 = vld [vmem:[#allocation31_spill] sm:$0xff] }
  0xba   : > { %1632 = vmatprep.mubr.f32.mxu1 %v2829_v9  ;;  %2262 = vmatpush1.msra.mxu1 %v2953_v17  ;;  %v4776_v17 = vand.u32 4294901760, %v3115_v15  ;;  %v4794_v15 = vand.u32 4294901760, %v4791_v63 }
  0xbb   : > { %1303 = vmatmul.mubr.f32.gmra.mxu0 %v3216_v27  ;;  %2264 = vmatprep.subr.mxu1 %v2956_v18  ;;  %v4777_v18 = vand.u32 4294901760, %v3216_v27 }
  0xbc   : > { %1308 = vmatprep.mubr.f32.mxu0 %v2829_v9  ;;  %1949 = vmatpush1.msra.mxu0 %v4773_v11 }
  0xbd   : > { %1636 = vmatmul.mubr.f32.gmra.mxu1 %v4774_v12  ;;  %1953 = vmatprep.subr.mxu0 %v4775_v16 }
  0xbe   : > { %1641 = vmatprep.mubr.f32.mxu1 %v2829_v9  ;;  %2266 = vmatpush1.msra.mxu1 %v2978_v23  ;;  %v4779_v23 = vand.u32 4294901760, %v3157_v8  ;;  %v261_v8 = vld [vmem:[%s4593_s2] sm:$0x3] }
  0xbf   : > { %1311 = vmatmul.mubr.f32.gmra.mxu0 %v3233_v52  ;;  %2268 = vmatprep.subr.mxu1 %v2984_v25  ;;  %v4780_v25 = vand.u32 4294901760, %v3233_v52 }
  0xc0   : > { %1316 = vmatprep.mubr.f32.mxu0 %v2829_v9  ;;  %1957 = vmatpush1.msra.mxu0 %v4776_v17  ;;  %v4802_v17 = vand.u32 4294901760, %v4799_v3 }
  0xc1   : > { %1645 = vmatmul.mubr.f32.gmra.mxu1 %v4777_v18  ;;  %1961 = vmatprep.subr.mxu0 %v4778_v36 }
  0xc2   : > { %1650 = vmatprep.mubr.f32.mxu1 %v2829_v9  ;;  %2270 = vmatpush1.msra.mxu1 %v3009_v31  ;;  %v4782_v31 = vand.u32 4294901760, %v3172_v53 }
  0xc3   : > { %1319 = vmatmul.mubr.f32.gmra.mxu0 %v3248_v54  ;;  %2272 = vmatprep.subr.mxu1 %v3015_v33  ;;  %v4783_v33 = vand.u32 4294901760, %v3248_v54  ;;  %v4789_v54 = vld [vmem:[#allocation19_spill] sm:$0xff] }
  0xc4   : > { %1324 = vmatprep.mubr.f32.mxu0 %v2829_v9  ;;  %1965 = vmatpush1.msra.mxu0 %v4779_v23  ;;  %v4792_v6 = vand.u32 4294901760, %v4789_v54 }
  0xc5   : > { %1654 = vmatmul.mubr.f32.gmra.mxu1 %v4780_v25  ;;  %1969 = vmatprep.subr.mxu0 %v4781_v41  ;;  %v4803_v41 = vld [vmem:[#allocation33_spill] sm:$0xff] }
  0xc6   : > { %1659 = vmatprep.mubr.f32.mxu1 %v2829_v9  ;;  %2274 = vmatpush1.msra.mxu1 %v3024_v37  ;;  %v4784_v37 = vand.u32 4294901760, %v3266_v45 }
  0xc7   : > { %1327 = vmatmul.mubr.f32.gmra.mxu0 %v3266_v45  ;;  %2276 = vmatprep.subr.mxu1 %v3044_v42  ;;  %v4785_v42 = vand.u32 4294901760, %v3276_v49  ;;  %v4787_v45 = vld [vmem:[#allocation17_spill] sm:$0xff] }
  0xc8   : > { %1332 = vmatprep.mubr.f32.mxu0 %v2829_v9  ;;  %1973 = vmatpush1.msra.mxu0 %v4782_v31  ;;  %v4790_v58 = vand.u32 4294901760, %v4787_v45 }
  0xc9   : > { %1663 = vmatmul.mubr.f32.gmra.mxu1 %v4783_v33 }
  0xca   : > { %1668 = vmatprep.mubr.f32.mxu1 %v2829_v9  ;;  %2278 = vmatpush1.msra.mxu1 %v3064_v50  ;;  %v4788_v50 = vand.u32 4294901760, %v3312_v57 }
  0xcb   : > { %1335 = vmatmul.mubr.f32.gmra.mxu0 %v3276_v49 }
  0xcc   : > { %1340 = vmatprep.mubr.f32.mxu0 %v2829_v9 }
  0xcd   : > { %1672 = vmatmul.mubr.f32.gmra.mxu1 %v4784_v37 }
  0xce   : > { %1677 = vmatprep.mubr.f32.mxu1 %v2829_v9 }
  0xcf   : > { %1343 = vmatmul.mubr.f32.gmra.mxu0 %v3301_v34  ;;  %v263_v34 = vlaneseq }
  0xd0   : > { %1348 = vmatprep.mubr.f32.mxu0 %v2829_v9 }
  0xd1   : > { %1681 = vmatmul.mubr.f32.gmra.mxu1 %v4785_v42  ;;  %v264_v7 = vshrl.u32 %v263_v34, 7  ;;  %v4805_v34 = vld [vmem:[#allocation35_spill] sm:$0xff] }
  0xd2   : > { %1686 = vmatprep.mubr.f32.mxu1 %v2829_v9 }
  0xd3   : > { %1351 = vmatmul.mubr.f32.gmra.mxu0 %v3312_v57  ;;  %v265_v55 = vsub.s32 0, %v264_v7  ;;  %v269_v27 = vsub.s32 1, %v264_v7  ;;  %v4798_v57 = vand.u32 4294901760, %v4795_v60 }
  0xd4   : > { %1356 = vmatprep.mubr.f32.mxu0 %v2829_v9 }
  0xd5   : > { %1690 = vmatmul.mubr.f32.gmra.mxu1 %v4786_v46  ;;  %v3770_v53 = vrot.slane %v261_v8, %v265_v55  ;;  %v3778_v28 = vrot.slane %v261_v8, %v269_v27  ;;  %v4804_v46 = vand.u32 4294901760, %v4801_v5 }
  0xd6   : > { %1695 = vmatprep.mubr.f32.mxu1 %v2829_v9 }
  0xd7   : > { %1359 = vmatmul.mubr.f32.gmra.mxu0 %v4787_v45 }
  0xd8   : > { %1364 = vmatprep.mubr.f32.mxu0 %v2829_v9 }
  0xd9   : > { %1699 = vmatmul.mubr.f32.gmra.mxu1 %v4788_v50 }
  0xda   : > { %1704 = vmatprep.mubr.f32.mxu1 %v2829_v9 }
  0xdb   : > { %1367 = vmatmul.mubr.f32.gmra.mxu0 %v4789_v54 }
  0xdc   : > { %1372 = vmatprep.mubr.f32.mxu0 %v2829_v9 }
  0xdd   : > { %1708 = vmatmul.mubr.f32.gmra.mxu1 %v4790_v58 }
  0xde   : > { %1713 = vmatprep.mubr.f32.mxu1 %v2829_v9 }
  0xdf   : > { %1375 = vmatmul.mubr.f32.gmra.mxu0 %v4791_v63 }
  0xe0   : > { %1380 = vmatprep.mubr.f32.mxu0 %v2829_v9 }
  0xe1   : > { %1717 = vmatmul.mubr.f32.gmra.mxu1 %v4792_v6 }
  0xe2   : > { %1722 = vmatprep.mubr.f32.mxu1 %v2829_v9 }
  0xe3   : > { %1383 = vmatmul.mubr.f32.gmra.mxu0 %v4793_v13 }
  0xe4   : > { %1388 = vmatprep.mubr.f32.mxu0 %v2829_v9 }
  0xe5   : > { %1726 = vmatmul.mubr.f32.gmra.mxu1 %v4794_v15  ;;  %v4806_v15 = vand.u32 4294901760, %v4803_v41 }
  0xe6   : > { %1731 = vmatprep.mubr.f32.mxu1 %v2829_v9 }
  0xe7   : > { %1391 = vmatmul.mubr.f32.gmra.mxu0 %v4795_v60 }
  0xe8   : > { %1396 = vmatprep.mubr.f32.mxu0 %v2829_v9 }
  0xe9   : > { %v457_v43 = vpop.f32.mrf.mxu0  ;;  %1735 = vmatmul.mubr.f32.gmra.mxu1 %v4796_v51  ;;  %v4807_v51 = vld [vmem:[#allocation38_spill] sm:$0xff] }
  0xea   : > { %1740 = vmatprep.mubr.f32.mxu1 %v2829_v9  ;;  %v458_v48 = vadd.f32 %v457_v43, %v3770_v53 }
  0xeb   : > { %1399 = vmatmul.mubr.f32.gmra.mxu0 %v4797_v47  ;;  %v459_v52 = vpop.f32.mrf.mxu0 }
  0xec   : > { %1404 = vmatprep.mubr.f32.mxu0 %v2829_v9  ;;  %v460_v19 = vadd.f32 %v459_v52, %v3778_v28 }
  0xed   : > { %v468_v49 = vpop.f32.mrf.mxu0  ;;  %1744 = vmatmul.mubr.f32.gmra.mxu1 %v4798_v57  ;;  %v4808_v57 = vand.u32 4294901760, %v4805_v34 }
  0xee   : > { %1749 = vmatprep.mubr.f32.mxu1 %v2829_v9  ;;  %v469_v26 = vadd.f32 %v468_v49, %v3770_v53 }
  0xef   : > { %1407 = vmatmul.mubr.f32.gmra.mxu0 %v4799_v3  ;;  %v470_v56 = vpop.f32.mrf.mxu0 }
  0xf0   : > { %1412 = vmatprep.mubr.f32.mxu0 %v2829_v9  ;;  %v471_v18 = vadd.f32 %v470_v56, %v3778_v28 }
  0xf1   : > { %v950_v29 = vpop.f32.mrf.mxu1  ;;  %1753 = vmatmul.mubr.f32.gmra.mxu1 %v4800_v24  ;;  %v4809_v24 = vld [vmem:[#allocation40_spill] sm:$0xff] }
  0xf2   : > { %v3787_v32 = vadd.f32 %v950_v29, %v458_v48  ;;  %1758 = vmatprep.mubr.f32.mxu1 %v2829_v9 }
  0xf3   : > { %v479_v4 = vpop.f32.mrf.mxu0  ;;  %1415 = vmatmul.mubr.f32.gmra.mxu0 %v4801_v5  ;;  %v952_v10 = vpop.f32.mrf.mxu1 }
  0xf4   : > { %v3791_v11 = vadd.f32 %v952_v10, %v460_v19  ;;  %1420 = vmatprep.mubr.f32.mxu0 %v2829_v9  ;;  %v480_v36 = vadd.f32 %v479_v4, %v3770_v53  ;;  %v4810_v10 = vand.u32 4294901760, %v4807_v51 }
  0xf5   : > { %v481_v12 = vpop.f32.mrf.mxu0  ;;  %v957_v16 = vpop.f32.mrf.mxu1  ;;  %1762 = vmatmul.mubr.f32.gmra.mxu1 %v4802_v17 }
  0xf6   : > { %v3798_v23 = vadd.f32 %v957_v16, %v469_v26  ;;  %1767 = vmatprep.mubr.f32.mxu1 %v2829_v9  ;;  %v482_v45 = vadd.f32 %v481_v12, %v3778_v28 }
  0xf7   : > { %v490_v25 = vpop.f32.mrf.mxu0  ;;  %1423 = vmatmul.mubr.f32.gmra.mxu0 %v4803_v41  ;;  %v959_v31 = vpop.f32.mrf.mxu1 }
  0xf8   : > { %v3802_v33 = vadd.f32 %v959_v31, %v471_v18  ;;  %1428 = vmatprep.mubr.f32.mxu0 %v2829_v9  ;;  %v491_v50 = vadd.f32 %v490_v25, %v3770_v53 }
  0xf9   : > { %v492_v37 = vpop.f32.mrf.mxu0  ;;  %v964_v42 = vpop.f32.mrf.mxu1  ;;  %1771 = vmatmul.mubr.f32.gmra.mxu1 %v4804_v46 }
  0xfa   : > { %v3809_v54 = vadd.f32 %v964_v42, %v480_v36  ;;  %1776 = vmatprep.mubr.f32.mxu1 %v2829_v9  ;;  %v493_v55 = vadd.f32 %v492_v37, %v3778_v28  ;;  %v4811_v36 = vld [vmem:[#allocation41_spill] sm:$0xff]  ;;  %v4812_v42 = vand.u32 4294901760, %v4809_v24 }
  0xfb   : > { %v501_v58 = vpop.f32.mrf.mxu0  ;;  %1431 = vmatmul.mubr.f32.gmra.mxu0 %v4805_v34  ;;  %v966_v63 = vpop.f32.mrf.mxu1  ;;  %v4813_v34 = vld [vmem:[#allocation42_spill] sm:$0xff] }
  0xfc   : > { %v3813_v6 = vadd.f32 %v966_v63, %v482_v45  ;;  %1436 = vmatprep.mubr.f32.mxu0 %v2829_v9  ;;  %v502_v60 = vadd.f32 %v501_v58, %v3770_v53 }
  0xfd   : > { %v503_v7 = vpop.f32.mrf.mxu0  ;;  %v971_v13 = vpop.f32.mrf.mxu1  ;;  %1780 = vmatmul.mubr.f32.gmra.mxu1 %v4806_v15 }
  0xfe   : > { %v3820_v8 = vadd.f32 %v971_v13, %v491_v50  ;;  %1785 = vmatprep.mubr.f32.mxu1 %v2829_v9  ;;  %v504_v48 = vadd.f32 %v503_v7, %v3778_v28 }
  0xff   : > { %v512_v43 = vpop.f32.mrf.mxu0  ;;  %1439 = vmatmul.mubr.f32.gmra.mxu0 %v4807_v51  ;;  %v973_v27 = vpop.f32.mrf.mxu1 }
 0x100   : > { %v3824_v47 = vadd.f32 %v973_v27, %v493_v55  ;;  %1444 = vmatprep.mubr.f32.mxu0 %v2829_v9  ;;  %v513_v3 = vadd.f32 %v512_v43, %v3770_v53  ;;  %v4814_v55 = vand.u32 4294901760, %v4811_v36 }
 0x101   : > { %v514_v52 = vpop.f32.mrf.mxu0  ;;  %v978_v49 = vpop.f32.mrf.mxu1  ;;  %1789 = vmatmul.mubr.f32.gmra.mxu1 %v4808_v57 }
 0x102   : > { %v3831_v56 = vadd.f32 %v978_v49, %v502_v60  ;;  %1794 = vmatprep.mubr.f32.mxu1 %v2829_v9  ;;  %v515_v12 = vadd.f32 %v514_v52, %v3778_v28  ;;  %v4815_v52 = vld [vmem:[#allocation43_spill] sm:$0xff] }
 0x103   : > { %v523_v29 = vpop.f32.mrf.mxu0  ;;  %1447 = vmatmul.mubr.f32.gmra.mxu0 %v4809_v24  ;;  %v980_v19 = vpop.f32.mrf.mxu1 }
 0x104   : > { %v3835_v26 = vadd.f32 %v980_v19, %v504_v48  ;;  %1452 = vmatprep.mubr.f32.mxu0 %v2829_v9  ;;  %v524_v16 = vadd.f32 %v523_v29, %v3770_v53  ;;  %v4816_v29 = vand.u32 4294901760, %v4813_v34 }
 0x105   : > { %v525_v4 = vpop.f32.mrf.mxu0  ;;  %v985_v5 = vpop.f32.mrf.mxu1  ;;  %1798 = vmatmul.mubr.f32.gmra.mxu1 %v4810_v10 }
 0x106   : > { %v3842_v17 = vadd.f32 %v985_v5, %v513_v3  ;;  %1803 = vmatprep.mubr.f32.mxu1 %v2829_v9  ;;  %v526_v46 = vadd.f32 %v525_v4, %v3778_v28 }
 0x107   : > { %v534_v18 = vpop.f32.mrf.mxu0  ;;  %1455 = vmatmul.mubr.f32.gmra.mxu0 %v4811_v36  ;;  %v987_v25 = vpop.f32.mrf.mxu1  ;;  %v4817_v36 = vand.u32 4294901760, %v4815_v52 }
 0x108   : > { %v3846_v41 = vadd.f32 %v987_v25, %v515_v12  ;;  %1460 = vmatprep.mubr.f32.mxu0 %v2829_v9  ;;  %v535_v45 = vadd.f32 %v534_v18, %v3770_v53 }
 0x109   : > { %v536_v31 = vpop.f32.mrf.mxu0  ;;  %v992_v37 = vpop.f32.mrf.mxu1  ;;  %1807 = vmatmul.mubr.f32.gmra.mxu1 %v4812_v42 }
 0x10a   : > { %v3853_v50 = vadd.f32 %v992_v37, %v524_v16  ;;  %1812 = vmatprep.mubr.f32.mxu1 %v2829_v9  ;;  %v537_v60 = vadd.f32 %v536_v31, %v3778_v28 }
 0x10b   : > { %v545_v58 = vpop.f32.mrf.mxu0  ;;  %1463 = vmatmul.mubr.f32.gmra.mxu0 %v4813_v34  ;;  %v994_v63 = vpop.f32.mrf.mxu1 }
 0x10c   : > { %v3857_v7 = vadd.f32 %v994_v63, %v526_v46  ;;  %1468 = vmatprep.mubr.f32.mxu0 %v2829_v9  ;;  %v546_v43 = vadd.f32 %v545_v58, %v3770_v53  ;;  %v4818_v63 = vand.u32 4294901760, %v3553_v39 }
 0x10d   : > { %v547_v13 = vpop.f32.mrf.mxu0  ;;  %v999_v15 = vpop.f32.mrf.mxu1  ;;  %1816 = vmatmul.mubr.f32.gmra.mxu1 %v4814_v55 }
 0x10e   : > { %v3864_v51 = vadd.f32 %v999_v15, %v535_v45  ;;  %1821 = vmatprep.mubr.f32.mxu1 %v2829_v9  ;;  %v548_v24 = vadd.f32 %v547_v13, %v3778_v28 }
 0x10f   : > { %v556_v27 = vpop.f32.mrf.mxu0  ;;  %1471 = vmatmul.mubr.f32.gmra.mxu0 %v4815_v52  ;;  %v1001_v49 = vpop.f32.mrf.mxu1 }
 0x110   : > { %v3868_v57 = vadd.f32 %v1001_v49, %v537_v60  ;;  %1476 = vmatprep.mubr.f32.mxu0 %v2829_v9  ;;  %v557_v19 = vadd.f32 %v556_v27, %v3770_v53 }
 0x111   : > { %v558_v48 = vpop.f32.mrf.mxu0  ;;  %v1006_v3 = vpop.f32.mrf.mxu1  ;;  %1825 = vmatmul.mubr.f32.gmra.mxu1 %v4816_v29 }
 0x112   : > { %v3875_v4 = vadd.f32 %v1006_v3, %v546_v43  ;;  %1830 = vmatprep.mubr.f32.mxu1 %v2829_v9  ;;  %v559_v25 = vadd.f32 %v558_v48, %v3778_v28 }
 0x113   : > { %v567_v5 = vpop.f32.mrf.mxu0  ;;  %1479 = vmatmul.mubr.f32.gmra.mxu0 %v3553_v39  ;;  %v1008_v10 = vpop.f32.mrf.mxu1  ;;  %v4819_v39 = vand.u32 4294901760, %v3567_v20 }
 0x114   : > { %v3879_v12 = vadd.f32 %v1008_v10, %v548_v24  ;;  %1484 = vmatprep.mubr.f32.mxu0 %v2829_v9  ;;  %v568_v31 = vadd.f32 %v567_v5, %v3770_v53 }
 0x115   : > { %v569_v16 = vpop.f32.mrf.mxu0  ;;  %v1013_v18 = vpop.f32.mrf.mxu1  ;;  %1834 = vmatmul.mubr.f32.gmra.mxu1 %v4817_v36 }
 0x116   : > { %v3886_v37 = vadd.f32 %v1013_v18, %v557_v19  ;;  %1839 = vmatprep.mubr.f32.mxu1 %v2829_v9  ;;  %v570_v13 = vadd.f32 %v569_v16, %v3778_v28 }
 0x117   : > { %v578_v42 = vpop.f32.mrf.mxu0  ;;  %1487 = vmatmul.mubr.f32.gmra.mxu0 %v3567_v20  ;;  %v1015_v46 = vpop.f32.mrf.mxu1  ;;  %v4820_v20 = vand.u32 4294901760, %v3582_v38 }
 0x118   : > { %v3890_v45 = vadd.f32 %v1015_v46, %v559_v25  ;;  %1492 = vmatprep.mubr.f32.mxu0 %v2829_v9  ;;  %v579_v15 = vadd.f32 %v578_v42, %v3770_v53 }
 0x119   : > { %v580_v58 = vpop.f32.mrf.mxu0  ;;  %v1020_v34 = vpop.f32.mrf.mxu1  ;;  %1843 = vmatmul.mubr.f32.gmra.mxu1 %v4818_v63 }
 0x11a   : > { %v3897_v55 = vadd.f32 %v1020_v34, %v568_v31  ;;  %1848 = vmatprep.mubr.f32.mxu1 %v2829_v9  ;;  %v581_v48 = vadd.f32 %v580_v58, %v3778_v28 }
 0x11b   : > { %v589_v60 = vpop.f32.mrf.mxu0  ;;  %1495 = vmatmul.mubr.f32.gmra.mxu0 %v3582_v38  ;;  %v1022_v43 = vpop.f32.mrf.mxu1  ;;  %v4821_v38 = vand.u32 4294901760, %v3598_v62 }
 0x11c   : > { %v3901_v27 = vadd.f32 %v1022_v43, %v570_v13  ;;  %1500 = vmatprep.mubr.f32.mxu0 %v2829_v9  ;;  %v590_v3 = vadd.f32 %v589_v60, %v3770_v53 }
 0x11d   : > { %v591_v52 = vpop.f32.mrf.mxu0  ;;  %v1027_v49 = vpop.f32.mrf.mxu1  ;;  %1852 = vmatmul.mubr.f32.gmra.mxu1 %v4819_v39 }
 0x11e   : > { %v3908_v29 = vadd.f32 %v1027_v49, %v579_v15  ;;  %1857 = vmatprep.mubr.f32.mxu1 %v2829_v9  ;;  %v592_v18 = vadd.f32 %v591_v52, %v3778_v28 }
 0x11f   : > { %v600_v24 = vpop.f32.mrf.mxu0  ;;  %1503 = vmatmul.mubr.f32.gmra.mxu0 %v3598_v62  ;;  %v1029_v19 = vpop.f32.mrf.mxu1 }
 0x120   : > { %v3912_v5 = vadd.f32 %v1029_v19, %v581_v48  ;;  %1508 = vmatprep.mubr.f32.mxu0 %v2829_v9  ;;  %v601_v36 = vadd.f32 %v600_v24, %v3770_v53  ;;  %v4822_v19 = vld [vmem:[#allocation5_spill] sm:$0xff] }
 0x121   : > { %v602_v10 = vpop.f32.mrf.mxu0  ;;  %v1034_v16 = vpop.f32.mrf.mxu1  ;;  %1861 = vmatmul.mubr.f32.gmra.mxu1 %v4820_v20 }
 0x122   : > { %v3919_v25 = vadd.f32 %v1034_v16, %v590_v3  ;;  %1866 = vmatprep.mubr.f32.mxu1 %v2829_v9  ;;  %v603_v63 = vadd.f32 %v602_v10, %v3778_v28 }
 0x123   : > { %v611_v31 = vpop.f32.mrf.mxu0  ;;  %1511 = vmatmul.mubr.f32.gmra.mxu0 %v3610_v1  ;;  %v1036_v42 = vpop.f32.mrf.mxu1 }
 0x124   : > { %v3923_v46 = vadd.f32 %v1036_v42, %v592_v18  ;;  %1516 = vmatprep.mubr.f32.mxu0 %v2829_v9  ;;  %v612_v13 = vadd.f32 %v611_v31, %v3770_v53  ;;  %v4823_v42 = vld [vmem:[#allocation6_spill] sm:$0xff] }
 0x125   : > { %v613_v58 = vpop.f32.mrf.mxu0  ;;  %v1041_v34 = vpop.f32.mrf.mxu1  ;;  %1870 = vmatmul.mubr.f32.gmra.mxu1 %v4821_v38 }
 0x126   : > { %v3930_v15 = vadd.f32 %v1041_v34, %v601_v36  ;;  %1875 = vmatprep.mubr.f32.mxu1 %v2829_v9  ;;  %v614_v62 = vadd.f32 %v613_v58, %v3778_v28 }
 0x127   : > { %v622_v60 = vpop.f32.mrf.mxu0  ;;  %1519 = vmatmul.mubr.f32.gmra.mxu0 %v3620_v14  ;;  %v1043_v43 = vpop.f32.mrf.mxu1 }
 0x128   : > { %v3934_v52 = vadd.f32 %v1043_v43, %v603_v63  ;;  %2006 = vmatprep.mubr.f32.mxu0 %v2829_v9  ;;  %v623_v48 = vadd.f32 %v622_v60, %v3770_v53  ;;  %v4824_v43 = vld [vmem:[#allocation7_spill] sm:$0xff] }
 0x129   : > { %v624_v49 = vpop.f32.mrf.mxu0  ;;  %v1048_v39 = vpop.f32.mrf.mxu1  ;;  %1879 = vmatmul.mubr.f32.gmra.mxu1 %v783_v44 }
 0x12a   : > { %v3941_v3 = vadd.f32 %v1048_v39, %v612_v13  ;;  %1884 = vmatprep.mubr.f32.mxu1 %v2829_v9  ;;  %v625_v1 = vadd.f32 %v624_v49, %v3778_v28 }
 0x12b   : > { %v633_v24 = vpop.f32.mrf.mxu0  ;;  %2008 = vmatmul.mubr.f32.vlgmr.msra.gmra.mxu0 %v4822_v19  ;;  %v1050_v10 = vpop.f32.mrf.mxu1 }
 0x12c   : > { %v3945_v16 = vadd.f32 %v1050_v10, %v614_v62  ;;  %2013 = vmatprep.mubr.f32.mxu0 %v2829_v9  ;;  %v634_v44 = vadd.f32 %v633_v24, %v3770_v53 }
 0x12d   : > { %v635_v20 = vpop.f32.mrf.mxu0  ;;  %v1055_v18 = vpop.f32.mrf.mxu1  ;;  %1888 = vmatmul.mubr.f32.gmra.mxu1 %v794_v22 }
 0x12e   : > { %v3952_v36 = vadd.f32 %v1055_v18, %v623_v48  ;;  %2311 = vmatprep.mubr.f32.mxu1 %v2829_v9  ;;  %v636_v14 = vadd.f32 %v635_v20, %v3778_v28  ;;  %v4825_v18 = vld [vmem:[#allocation8_spill] sm:$0xff] }
 0x12f   : > { %v644_v31 = vpop.f32.mrf.mxu0  ;;  %2015 = vmatmul.mubr.f32.gmra.mxu0 %v4823_v42  ;;  %v1057_v58 = vpop.f32.mrf.mxu1 }
 0x130   : > { %v3956_v34 = vadd.f32 %v1057_v58, %v625_v1  ;;  %2020 = vmatprep.mubr.f32.mxu0 %v2829_v9  ;;  %v645_v22 = vadd.f32 %v644_v31, %v3770_v53 }
 0x131   : > { %v646_v38 = vpop.f32.mrf.mxu0  ;;  %v1062_v63 = vpop.f32.mrf.mxu1  ;;  %2313 = vmatmul.mubr.f32.vlgmr.msra.gmra.mxu1 %v4822_v19 }
 0x132   : > { %v3962_v13 = vadd.f32 %v1062_v63, %v634_v44  ;;  %2318 = vmatprep.mubr.f32.mxu1 %v2829_v9  ;;  %v647_v24 = vadd.f32 %v646_v38, %v3778_v28 }
 0x133   : > { %v655_v60 = vpop.f32.mrf.mxu0  ;;  %2022 = vmatmul.mubr.f32.gmra.mxu0 %v4824_v43  ;;  %v1064_v49 = vpop.f32.mrf.mxu1 }
 0x134   : > { %v3966_v39 = vadd.f32 %v1064_v49, %v636_v14  ;;  %2027 = vmatprep.mubr.f32.mxu0 %v2829_v9  ;;  %v656_v19 = vadd.f32 %v655_v60, %v3770_v53 }
 0x135   : > { %v657_v62 = vpop.f32.mrf.mxu0  ;;  %v1069_v48 = vpop.f32.mrf.mxu1  ;;  %2320 = vmatmul.mubr.f32.gmra.mxu1 %v4823_v42 }
 0x136   : > { %v3972_v10 = vadd.f32 %v1069_v48, %v645_v22  ;;  %2325 = vmatprep.mubr.f32.mxu1 %v2829_v9  ;;  %v658_v42 = vadd.f32 %v657_v62, %v3778_v28  ;;  %v4826_v22 = vld [vmem:[#allocation9_spill] sm:$0xff] }
 0x137   : > { %v666_v20 = vpop.f32.mrf.mxu0  ;;  %2029 = vmatmul.mubr.f32.gmra.mxu0 %v4825_v18  ;;  %v1071_v1 = vpop.f32.mrf.mxu1 }
 0x138   : > { %v3976_v44 = vadd.f32 %v1071_v1, %v647_v24  ;;  %2034 = vmatprep.mubr.f32.mxu0 %v2829_v9  ;;  %v667_v38 = vadd.f32 %v666_v20, %v3770_v53  ;;  %v4829_v1 = vld [vmem:[#allocation10_spill] sm:$0xff] }
 0x139   : > { %v668_v31 = vpop.f32.mrf.mxu0  ;;  %v1076_v58 = vpop.f32.mrf.mxu1  ;;  %2327 = vmatmul.mubr.f32.gmra.mxu1 %v4824_v43 }
 0x13a   : > { %v3982_v63 = vadd.f32 %v1076_v58, %v656_v19  ;;  %2332 = vmatprep.mubr.f32.mxu1 %v2829_v9  ;;  %v669_v43 = vadd.f32 %v668_v31, %v3778_v28 }
 0x13b   : > { %v677_v14 = vpop.f32.mrf.mxu0  ;;  %2036 = vmatmul.mubr.f32.gmra.mxu0 %v4826_v22  ;;  %v1078_v60 = vpop.f32.mrf.mxu1 }
 0x13c   : > { %v3986_v49 = vadd.f32 %v1078_v60, %v658_v42  ;;  %2041 = vmatprep.mubr.f32.mxu0 %v2829_v9  ;;  %v678_v62 = vadd.f32 %v677_v14, %v3770_v53 }
 0x13d   : > { %v679_v48 = vpop.f32.mrf.mxu0  ;;  %v1083_v24 = vpop.f32.mrf.mxu1  ;;  %2334 = vmatmul.mubr.f32.gmra.mxu1 %v4825_v18 }
 0x13e   : > { %4827 = vst [vmem:[#allocation17_spill] sm:$0xff] %v3986_v49  ;;  %v3992_v19 = vadd.f32 %v1083_v24, %v667_v38  ;;  %2339 = vmatprep.mubr.f32.mxu1 %v2829_v9  ;;  %v680_v18 = vadd.f32 %v679_v48, %v3778_v28  ;;  %v4832_v24 = vld [vmem:[#allocation11_spill] sm:$0xff] }
 0x13f   : > { %v688_v20 = vpop.f32.mrf.mxu0  ;;  %2043 = vmatmul.mubr.f32.gmra.mxu0 %v4829_v1  ;;  %v1085_v58 = vpop.f32.mrf.mxu1 }
 0x140   : > { %4828 = vst [vmem:[#allocation19_spill] sm:$0xff] %v3992_v19  ;;  %v3996_v42 = vadd.f32 %v1085_v58, %v669_v43  ;;  %2048 = vmatprep.mubr.f32.mxu0 %v2829_v9  ;;  %v689_v31 = vadd.f32 %v688_v20, %v3770_v53  ;;  %v4835_v20 = vld [vmem:[#allocation12_spill] sm:$0xff] }
 0x141   : > { %v690_v60 = vpop.f32.mrf.mxu0  ;;  %v1090_v49 = vpop.f32.mrf.mxu1  ;;  %2341 = vmatmul.mubr.f32.gmra.mxu1 %v4826_v22 }
 0x142   : > { %4830 = vst [vmem:[#allocation22_spill] sm:$0xff] %v3996_v42  ;;  %v4002_v38 = vadd.f32 %v1090_v49, %v678_v62  ;;  %2346 = vmatprep.mubr.f32.mxu1 %v2829_v9  ;;  %v691_v22 = vadd.f32 %v690_v60, %v3778_v28 }
 0x143   : > { %v699_v14 = vpop.f32.mrf.mxu0  ;;  %2050 = vmatmul.mubr.f32.gmra.mxu0 %v4832_v24  ;;  %v1092_v19 = vpop.f32.mrf.mxu1 }
 0x144   : > { %4831 = vst [vmem:[#allocation23_spill] sm:$0xff] %v4002_v38  ;;  %v4006_v43 = vadd.f32 %v1092_v19, %v680_v18  ;;  %2055 = vmatprep.mubr.f32.mxu0 %v2829_v9  ;;  %v700_v48 = vadd.f32 %v699_v14, %v3770_v53  ;;  %v4838_v14 = vld [vmem:[#allocation13_spill] sm:$0xff] }
 0x145   : > { %v701_v58 = vpop.f32.mrf.mxu0  ;;  %v1097_v42 = vpop.f32.mrf.mxu1  ;;  %2348 = vmatmul.mubr.f32.gmra.mxu1 %v4829_v1 }
 0x146   : > { %4833 = vst [vmem:[#allocation26_spill] sm:$0xff] %v4006_v43  ;;  %v4012_v49 = vadd.f32 %v1097_v42, %v689_v31  ;;  %2353 = vmatprep.mubr.f32.mxu1 %v2829_v9  ;;  %v702_v1 = vadd.f32 %v701_v58, %v3778_v28 }
 0x147   : > { %v710_v62 = vpop.f32.mrf.mxu0  ;;  %2057 = vmatmul.mubr.f32.gmra.mxu0 %v4835_v20  ;;  %v1099_v38 = vpop.f32.mrf.mxu1 }
 0x148   : > { %4834 = vst [vmem:[#allocation28_spill] sm:$0xff] %v4012_v49  ;;  %v4016_v19 = vadd.f32 %v1099_v38, %v691_v22  ;;  %2062 = vmatprep.mubr.f32.mxu0 %v2829_v9  ;;  %v711_v60 = vadd.f32 %v710_v62, %v3770_v53  ;;  %v4841_v62 = vld [vmem:[#allocation14_spill] sm:$0xff] }
 0x149   : > { %v712_v18 = vpop.f32.mrf.mxu0  ;;  %v1104_v43 = vpop.f32.mrf.mxu1  ;;  %2355 = vmatmul.mubr.f32.gmra.mxu1 %v4832_v24 }
 0x14a   : > { %4836 = vst [vmem:[#allocation29_spill] sm:$0xff] %v4016_v19  ;;  %v4022_v42 = vadd.f32 %v1104_v43, %v700_v48  ;;  %2360 = vmatprep.mubr.f32.mxu1 %v2829_v9  ;;  %v713_v24 = vadd.f32 %v712_v18, %v3778_v28 }
 0x14b   : > { %v721_v31 = vpop.f32.mrf.mxu0  ;;  %2064 = vmatmul.mubr.f32.gmra.mxu0 %v4838_v14  ;;  %v1106_v49 = vpop.f32.mrf.mxu1 }
 0x14c   : > { %4837 = vst [vmem:[#allocation31_spill] sm:$0xff] %v4022_v42  ;;  %v4026_v38 = vadd.f32 %v1106_v49, %v702_v1  ;;  %2069 = vmatprep.mubr.f32.mxu0 %v2829_v9  ;;  %v722_v58 = vadd.f32 %v721_v31, %v3770_v53  ;;  %v4844_v31 = vld [vmem:[#allocation15_spill] sm:$0xff] }
 0x14d   : > { %v723_v22 = vpop.f32.mrf.mxu0  ;;  %v1111_v19 = vpop.f32.mrf.mxu1  ;;  %2362 = vmatmul.mubr.f32.gmra.mxu1 %v4835_v20 }
 0x14e   : > { %4839 = vst [vmem:[#allocation33_spill] sm:$0xff] %v4026_v38  ;;  %v4032_v43 = vadd.f32 %v1111_v19, %v711_v60  ;;  %2367 = vmatprep.mubr.f32.mxu1 %v2829_v9  ;;  %v724_v20 = vadd.f32 %v723_v22, %v3778_v28 }
 0x14f   : > { %v732_v48 = vpop.f32.mrf.mxu0  ;;  %2071 = vmatmul.mubr.f32.gmra.mxu0 %v4841_v62  ;;  %v1113_v42 = vpop.f32.mrf.mxu1 }
 0x150   : > { %4840 = vst [vmem:[#allocation35_spill] sm:$0xff] %v4032_v43  ;;  %v4036_v49 = vadd.f32 %v1113_v42, %v713_v24  ;;  %2076 = vmatprep.mubr.f32.mxu0 %v2829_v9  ;;  %v733_v18 = vadd.f32 %v732_v48, %v3770_v53  ;;  %v4847_v48 = vld [vmem:[#allocation16_spill] sm:$0xff] }
 0x151   : > { %v734_v1 = vpop.f32.mrf.mxu0  ;;  %v1118_v38 = vpop.f32.mrf.mxu1  ;;  %2369 = vmatmul.mubr.f32.gmra.mxu1 %v4838_v14 }
 0x152   : > { %4842 = vst [vmem:[#allocation38_spill] sm:$0xff] %v4036_v49  ;;  %v4042_v19 = vadd.f32 %v1118_v38, %v722_v58  ;;  %2374 = vmatprep.mubr.f32.mxu1 %v2829_v9  ;;  %v735_v14 = vadd.f32 %v734_v1, %v3778_v28 }
 0x153   : > { %v743_v60 = vpop.f32.mrf.mxu0  ;;  %2078 = vmatmul.mubr.f32.gmra.mxu0 %v4844_v31  ;;  %v1120_v43 = vpop.f32.mrf.mxu1 }
 0x154   : > { %4843 = vst [vmem:[#allocation40_spill] sm:$0xff] %v4042_v19  ;;  %v4046_v42 = vadd.f32 %v1120_v43, %v724_v20  ;;  %2083 = vmatprep.mubr.f32.mxu0 %v2829_v9  ;;  %v744_v22 = vadd.f32 %v743_v60, %v3770_v53  ;;  %v4850_v60 = vld [vmem:[#allocation18_spill] sm:$0xff] }
 0x155   : > { %v745_v24 = vpop.f32.mrf.mxu0  ;;  %v1125_v49 = vpop.f32.mrf.mxu1  ;;  %2376 = vmatmul.mubr.f32.gmra.mxu1 %v4841_v62 }
 0x156   : > { %4845 = vst [vmem:[#allocation41_spill] sm:$0xff] %v4046_v42  ;;  %v4052_v38 = vadd.f32 %v1125_v49, %v733_v18  ;;  %2381 = vmatprep.mubr.f32.mxu1 %v2829_v9  ;;  %v746_v62 = vadd.f32 %v745_v24, %v3778_v28 }
 0x157   : > { %v754_v58 = vpop.f32.mrf.mxu0  ;;  %2085 = vmatmul.mubr.f32.gmra.mxu0 %v4847_v48  ;;  %v1127_v19 = vpop.f32.mrf.mxu1 }
 0x158   : > { %4846 = vst [vmem:[#allocation42_spill] sm:$0xff] %v4052_v38  ;;  %v4056_v43 = vadd.f32 %v1127_v19, %v735_v14  ;;  %2090 = vmatprep.mubr.f32.mxu0 %v2829_v9  ;;  %v755_v1 = vadd.f32 %v754_v58, %v3770_v53  ;;  %v4853_v58 = vld [vmem:[#allocation20_spill] sm:$0xff] }
 0x159   : > { %v756_v20 = vpop.f32.mrf.mxu0  ;;  %v1132_v42 = vpop.f32.mrf.mxu1  ;;  %2383 = vmatmul.mubr.f32.gmra.mxu1 %v4844_v31 }
 0x15a   : > { %4848 = vst [vmem:[#allocation43_spill] sm:$0xff] %v4056_v43  ;;  %v4062_v49 = vadd.f32 %v1132_v42, %v744_v22  ;;  %2388 = vmatprep.mubr.f32.mxu1 %v2829_v9  ;;  %v757_v31 = vadd.f32 %v756_v20, %v3778_v28 }
 0x15b   : > { %v765_v18 = vpop.f32.mrf.mxu0  ;;  %2092 = vmatmul.mubr.f32.gmra.mxu0 %v4850_v60  ;;  %v1134_v38 = vpop.f32.mrf.mxu1 }
 0x15c   : > { %4849 = vst [vmem:[#allocation5_spill] sm:$0xff] %v4062_v49  ;;  %v4066_v19 = vadd.f32 %v1134_v38, %v746_v62  ;;  %2097 = vmatprep.mubr.f32.mxu0 %v2829_v9  ;;  %v766_v24 = vadd.f32 %v765_v18, %v3770_v53  ;;  %v4856_v18 = vld [vmem:[#allocation21_spill] sm:$0xff] }
 0x15d   : > { %v767_v14 = vpop.f32.mrf.mxu0  ;;  %v1139_v43 = vpop.f32.mrf.mxu1  ;;  %2390 = vmatmul.mubr.f32.gmra.mxu1 %v4847_v48 }
 0x15e   : > { %4851 = vst [vmem:[#allocation6_spill] sm:$0xff] %v4066_v19  ;;  %v4072_v42 = vadd.f32 %v1139_v43, %v755_v1  ;;  %2395 = vmatprep.mubr.f32.mxu1 %v2829_v9  ;;  %v768_v48 = vadd.f32 %v767_v14, %v3778_v28 }
 0x15f   : > { %v776_v22 = vpop.f32.mrf.mxu0  ;;  %2099 = vmatmul.mubr.f32.gmra.mxu0 %v4853_v58  ;;  %v1141_v49 = vpop.f32.mrf.mxu1 }
 0x160   : > { %4852 = vst [vmem:[#allocation7_spill] sm:$0xff] %v4072_v42  ;;  %v4076_v38 = vadd.f32 %v1141_v49, %v757_v31  ;;  %2104 = vmatprep.mubr.f32.mxu0 %v2829_v9  ;;  %v777_v20 = vadd.f32 %v776_v22, %v3770_v53  ;;  %v4859_v22 = vld [vmem:[#allocation24_spill] sm:$0xff] }
 0x161   : > { %v778_v62 = vpop.f32.mrf.mxu0  ;;  %v1146_v19 = vpop.f32.mrf.mxu1  ;;  %2397 = vmatmul.mubr.f32.gmra.mxu1 %v4850_v60 }
 0x162   : > { %4854 = vst [vmem:[#allocation8_spill] sm:$0xff] %v4076_v38  ;;  %v4082_v43 = vadd.f32 %v1146_v19, %v766_v24  ;;  %2402 = vmatprep.mubr.f32.mxu1 %v2829_v9  ;;  %v779_v60 = vadd.f32 %v778_v62, %v3778_v28 }
 0x163   : > { %v787_v1 = vpop.f32.mrf.mxu0  ;;  %2106 = vmatmul.mubr.f32.gmra.mxu0 %v4856_v18  ;;  %v1148_v42 = vpop.f32.mrf.mxu1 }
 0x164   : > { %4855 = vst [vmem:[#allocation9_spill] sm:$0xff] %v4082_v43  ;;  %v4086_v49 = vadd.f32 %v1148_v42, %v768_v48  ;;  %2111 = vmatprep.mubr.f32.mxu0 %v2829_v9  ;;  %v788_v14 = vadd.f32 %v787_v1, %v3770_v53  ;;  %v4861_v1 = vld [vmem:[#allocation25_spill] sm:$0xff] }
 0x165   : > { %v789_v31 = vpop.f32.mrf.mxu0  ;;  %v1153_v38 = vpop.f32.mrf.mxu1  ;;  %2404 = vmatmul.mubr.f32.gmra.mxu1 %v4853_v58 }
 0x166   : > { %4857 = vst [vmem:[#allocation10_spill] sm:$0xff] %v4086_v49  ;;  %v4092_v19 = vadd.f32 %v1153_v38, %v777_v20  ;;  %2409 = vmatprep.mubr.f32.mxu1 %v2829_v9  ;;  %v790_v58 = vadd.f32 %v789_v31, %v3778_v28 }
 0x167   : > { %v798_v24 = vpop.f32.mrf.mxu0  ;;  %2113 = vmatmul.mubr.f32.gmra.mxu0 %v4859_v22  ;;  %v1155_v43 = vpop.f32.mrf.mxu1 }
 0x168   : > { %4858 = vst [vmem:[#allocation11_spill] sm:$0xff] %v4092_v19  ;;  %v4096_v42 = vadd.f32 %v1155_v43, %v779_v60  ;;  %2118 = vmatprep.mubr.f32.mxu0 %v2829_v9  ;;  %v799_v62 = vadd.f32 %v798_v24, %v3770_v53  ;;  %v4862_v24 = vld [vmem:[#allocation27_spill] sm:$0xff] }
 0x169   : > { %v800_v48 = vpop.f32.mrf.mxu0  ;;  %v1160_v49 = vpop.f32.mrf.mxu1  ;;  %2411 = vmatmul.mubr.f32.gmra.mxu1 %v4856_v18 }
 0x16a   : > { %4860 = vst [vmem:[#allocation12_spill] sm:$0xff] %v4096_v42  ;;  %v4102_v38 = vadd.f32 %v1160_v49, %v788_v14  ;;  %2416 = vmatprep.mubr.f32.mxu1 %v2829_v9  ;;  %v801_v53 = vadd.f32 %v800_v48, %v3778_v28  ;;  %v4863_v48 = vld [vmem:[#allocation30_spill] sm:$0xff] }
 0x16b   : > { %v1272_v20 = vpop.f32.mrf.mxu0  ;;  %2120 = vmatmul.mubr.f32.gmra.mxu0 %v4861_v1  ;;  %v1162_v19 = vpop.f32.mrf.mxu1 }
 0x16c   : > { %v1273_v43 = vadd.f32 %v1272_v20, %v3787_v32  ;;  %v4107_v60 = vadd.f32 %v1162_v19, %v790_v58  ;;  %2125 = vmatprep.mubr.f32.mxu0 %v2829_v9 }
 0x16d   : > { %v1274_v42 = vpop.f32.mrf.mxu0  ;;  %v1167_v18 = vpop.f32.mrf.mxu1  ;;  %2418 = vmatmul.mubr.f32.gmra.mxu1 %v4859_v22 }
 0x16e   : > { %v1275_v49 = vadd.f32 %v1274_v42, %v3791_v11  ;;  %v4113_v31 = vadd.f32 %v1167_v18, %v799_v62  ;;  %2423 = vmatprep.mubr.f32.mxu1 %v2829_v9 }
 0x16f   : > { %v1280_v14 = vpop.f32.mrf.mxu0  ;;  %2127 = vmatmul.mubr.f32.gmra.mxu0 %v4862_v24  ;;  %v1169_v32 = vpop.f32.mrf.mxu1 }
 0x170   : > { %v1281_v19 = vadd.f32 %v1280_v14, %v3798_v23  ;;  %v4118_v58 = vadd.f32 %v1169_v32, %v801_v53  ;;  %2132 = vmatprep.mubr.f32.mxu0 %v2829_v9  ;;  %v4864_v32 = vld [vmem:[#allocation32_spill] sm:$0xff] }
 0x171   : > { %v1282_v20 = vpop.f32.mrf.mxu0  ;;  %v1610_v22 = vpop.f32.mrf.mxu1  ;;  %2425 = vmatmul.mubr.f32.gmra.mxu1 %v4861_v1 }
 0x172   : > { %v1283_v28 = vadd.f32 %v1282_v20, %v3802_v33  ;;  %v4123_v11 = vadd.f32 %v1610_v22, %v1273_v43  ;;  %2430 = vmatprep.mubr.f32.mxu1 %v2829_v9 }
 0x173   : > { %v1288_v42 = vpop.f32.mrf.mxu0  ;;  %2134 = vmatmul.mubr.f32.gmra.mxu0 %v4863_v48  ;;  %v1612_v62 = vpop.f32.mrf.mxu1 }
 0x174   : > { %v1289_v23 = vadd.f32 %v1288_v42, %v3809_v54  ;;  %v4128_v18 = vadd.f32 %v1612_v62, %v1275_v49  ;;  %2139 = vmatprep.mubr.f32.mxu0 %v2829_v9  ;;  %v4865_v62 = vld [vmem:[#allocation34_spill] sm:$0xff] }
 0x175   : > { %v1290_v53 = vpop.f32.mrf.mxu0  ;;  %v1619_v14 = vpop.f32.mrf.mxu1  ;;  %2432 = vmatmul.mubr.f32.gmra.mxu1 %v4862_v24 }
 0x176   : > { %v1291_v33 = vadd.f32 %v1290_v53, %v3813_v6  ;;  %v4133_v1 = vadd.f32 %v1619_v14, %v1281_v19  ;;  %2437 = vmatprep.mubr.f32.mxu1 %v2829_v9 }
 0x177   : > { %v1296_v43 = vpop.f32.mrf.mxu0  ;;  %2141 = vmatmul.mubr.f32.gmra.mxu0 %v4864_v32  ;;  %v1621_v20 = vpop.f32.mrf.mxu1 }
 0x178   : > { %v1297_v54 = vadd.f32 %v1296_v43, %v3820_v8  ;;  %v4138_v49 = vadd.f32 %v1621_v20, %v1283_v28  ;;  %2146 = vmatprep.mubr.f32.mxu0 %v2829_v9  ;;  %v4866_v20 = vld [vmem:[#allocation36_spill] sm:$0xff] }
 0x179   : > { %v1298_v22 = vpop.f32.mrf.mxu0  ;;  %v1628_v42 = vpop.f32.mrf.mxu1  ;;  %2439 = vmatmul.mubr.f32.gmra.mxu1 %v4863_v48 }
 0x17a   : > { %v1299_v6 = vadd.f32 %v1298_v22, %v3824_v47  ;;  %v4143_v24 = vadd.f32 %v1628_v42, %v1289_v23  ;;  %2444 = vmatprep.mubr.f32.mxu1 %v2829_v9 }
 0x17b   : > { %v1304_v19 = vpop.f32.mrf.mxu0  ;;  %2148 = vmatmul.mubr.f32.gmra.mxu0 %v4865_v62  ;;  %v1630_v53 = vpop.f32.mrf.mxu1 }
 0x17c   : > { %v1305_v8 = vadd.f32 %v1304_v19, %v3831_v56  ;;  %v4148_v28 = vadd.f32 %v1630_v53, %v1291_v33  ;;  %2153 = vmatprep.mubr.f32.mxu0 %v2829_v9  ;;  %v4867_v53 = vld [vmem:[#allocation37_spill] sm:$0xff] }
 0x17d   : > { %v1306_v14 = vpop.f32.mrf.mxu0  ;;  %v1637_v43 = vpop.f32.mrf.mxu1  ;;  %2446 = vmatmul.mubr.f32.gmra.mxu1 %v4864_v32 }
 0x17e   : > { %v1307_v47 = vadd.f32 %v1306_v14, %v3835_v26  ;;  %v4153_v48 = vadd.f32 %v1637_v43, %v1297_v54  ;;  %2451 = vmatprep.mubr.f32.mxu1 %v2829_v9 }
 0x17f   : > { %v1312_v23 = vpop.f32.mrf.mxu0  ;;  %2155 = vmatmul.mubr.f32.gmra.mxu0 %v4866_v20  ;;  %v1639_v22 = vpop.f32.mrf.mxu1 }
 0x180   : > { %v1313_v56 = vadd.f32 %v1312_v23, %v3842_v17  ;;  %v4158_v33 = vadd.f32 %v1639_v22, %v1299_v6  ;;  %2160 = vmatprep.mubr.f32.mxu0 %v2829_v9  ;;  %v4868_v22 = vld [vmem:[#allocation39_spill] sm:$0xff] }
 0x181   : > { %v1314_v42 = vpop.f32.mrf.mxu0  ;;  %v1646_v19 = vpop.f32.mrf.mxu1  ;;  %2453 = vmatmul.mubr.f32.gmra.mxu1 %v4865_v62 }
 0x182   : > { %v1315_v26 = vadd.f32 %v1314_v42, %v3846_v41  ;;  %v4163_v32 = vadd.f32 %v1646_v19, %v1305_v8  ;;  %2458 = vmatprep.mubr.f32.mxu1 %v2829_v9 }
 0x183   : > { %v1320_v54 = vpop.f32.mrf.mxu0  ;;  %2162 = vmatmul.mubr.f32.gmra.mxu0 %v4867_v53  ;;  %v1648_v14 = vpop.f32.mrf.mxu1 }
 0x184   : > { %v1321_v17 = vadd.f32 %v1320_v54, %v3853_v50  ;;  %v4168_v6 = vadd.f32 %v1648_v14, %v1307_v47  ;;  %2167 = vmatprep.mubr.f32.mxu0 %v2829_v9 }
 0x185   : > { %v1322_v43 = vpop.f32.mrf.mxu0  ;;  %v1655_v23 = vpop.f32.mrf.mxu1  ;;  %2460 = vmatmul.mubr.f32.gmra.mxu1 %v4866_v20 }
 0x186   : > { %v1323_v41 = vadd.f32 %v1322_v43, %v3857_v7  ;;  %v4173_v62 = vadd.f32 %v1655_v23, %v1313_v56  ;;  %2465 = vmatprep.mubr.f32.mxu1 %v2829_v9 }
 0x187   : > { %v1328_v8 = vpop.f32.mrf.mxu0  ;;  %2169 = vmatmul.mubr.f32.gmra.mxu0 %v4868_v22  ;;  %v1657_v42 = vpop.f32.mrf.mxu1 }
 0x188   : > { %v1329_v50 = vadd.f32 %v1328_v8, %v3864_v51  ;;  %v4178_v47 = vadd.f32 %v1657_v42, %v1315_v26  ;;  %2174 = vmatprep.mubr.f32.mxu0 %v2829_v9 }
 0x189   : > { %v1330_v19 = vpop.f32.mrf.mxu0  ;;  %v1664_v54 = vpop.f32.mrf.mxu1  ;;  %2467 = vmatmul.mubr.f32.gmra.mxu1 %v4867_v53 }
 0x18a   : > { %v1331_v7 = vadd.f32 %v1330_v19, %v3868_v57  ;;  %v4183_v20 = vadd.f32 %v1664_v54, %v1321_v17  ;;  %2472 = vmatprep.mubr.f32.mxu1 %v2829_v9 }
 0x18b   : > { %v1336_v56 = vpop.f32.mrf.mxu0  ;;  %2176 = vmatmul.mubr.f32.gmra.mxu0 %v3506_v59  ;;  %v1666_v14 = vpop.f32.mrf.mxu1 }
 0x18c   : > { %v1337_v51 = vadd.f32 %v1336_v56, %v3875_v4  ;;  %v4188_v26 = vadd.f32 %v1666_v14, %v1323_v41  ;;  %2181 = vmatprep.mubr.f32.mxu0 %v2829_v9 }
 0x18d   : > { %v1338_v43 = vpop.f32.mrf.mxu0  ;;  %v1673_v23 = vpop.f32.mrf.mxu1  ;;  %2474 = vmatmul.mubr.f32.gmra.mxu1 %v4868_v22 }
 0x18e   : > { %v1339_v57 = vadd.f32 %v1338_v43, %v3879_v12  ;;  %v4193_v53 = vadd.f32 %v1673_v23, %v1329_v50  ;;  %2479 = vmatprep.mubr.f32.mxu1 %v2829_v9 }
 0x18f   : > { %v1344_v17 = vpop.f32.mrf.mxu0  ;;  %2183 = vmatmul.mubr.f32.gmra.mxu0 %v3520_v2  ;;  %v1675_v8 = vpop.f32.mrf.mxu1 }
 0x190   : > { %v1345_v4 = vadd.f32 %v1344_v17, %v3886_v37  ;;  %v4198_v41 = vadd.f32 %v1675_v8, %v1331_v7  ;;  %2188 = vmatprep.mubr.f32.mxu0 %v2829_v9 }
 0x191   : > { %v1346_v42 = vpop.f32.mrf.mxu0  ;;  %v1682_v19 = vpop.f32.mrf.mxu1  ;;  %2481 = vmatmul.mubr.f32.gmra.mxu1 %v3506_v59 }
 0x192   : > { %v1347_v12 = vadd.f32 %v1346_v42, %v3890_v45  ;;  %v4203_v22 = vadd.f32 %v1682_v19, %v1337_v51  ;;  %2486 = vmatprep.mubr.f32.mxu1 %v2829_v9 }
 0x193   : > { %v1352_v50 = vpop.f32.mrf.mxu0  ;;  %2190 = vmatmul.mubr.f32.gmra.mxu0 %v3541_v21  ;;  %v1684_v54 = vpop.f32.mrf.mxu1 }
 0x194   : > { %v1353_v37 = vadd.f32 %v1352_v50, %v3897_v55  ;;  %v4208_v7 = vadd.f32 %v1684_v54, %v1339_v57  ;;  %2195 = vmatprep.mubr.f32.mxu0 %v2829_v9 }
 0x195   : > { %v1354_v56 = vpop.f32.mrf.mxu0  ;;  %v1691_v14 = vpop.f32.mrf.mxu1  ;;  %2488 = vmatmul.mubr.f32.gmra.mxu1 %v3520_v2 }
 0x196   : > { %v1355_v59 = vadd.f32 %v1354_v56, %v3901_v27  ;;  %v4213_v45 = vadd.f32 %v1691_v14, %v1345_v4  ;;  %2493 = vmatprep.mubr.f32.mxu1 %v2829_v9 }
 0x197   : > { %v1360_v51 = vpop.f32.mrf.mxu0  ;;  %2197 = vmatmul.mubr.f32.gmra.mxu0 %v3555_v61  ;;  %v1693_v43 = vpop.f32.mrf.mxu1 }
 0x198   : > { %v1361_v55 = vadd.f32 %v1360_v51, %v3908_v29  ;;  %v4218_v23 = vadd.f32 %v1693_v43, %v1347_v12  ;;  %2202 = vmatprep.mubr.f32.mxu0 %v2829_v9 }
 0x199   : > { %v1362_v57 = vpop.f32.mrf.mxu0  ;;  %v1700_v17 = vpop.f32.mrf.mxu1  ;;  %2495 = vmatmul.mubr.f32.gmra.mxu1 %v3541_v21 }
 0x19a   : > { %v1363_v2 = vadd.f32 %v1362_v57, %v3912_v5  ;;  %v4223_v27 = vadd.f32 %v1700_v17, %v1353_v37  ;;  %2500 = vmatprep.mubr.f32.mxu1 %v2829_v9 }
 0x19b   : > { %v1368_v8 = vpop.f32.mrf.mxu0  ;;  %2204 = vmatmul.mubr.f32.gmra.mxu0 %v3569_v30  ;;  %v1702_v4 = vpop.f32.mrf.mxu1 }
 0x19c   : > { %v1369_v29 = vadd.f32 %v1368_v8, %v3919_v25  ;;  %v4228_v42 = vadd.f32 %v1702_v4, %v1355_v59  ;;  %2209 = vmatprep.mubr.f32.mxu0 %v2829_v9 }
 0x19d   : > { %v1370_v19 = vpop.f32.mrf.mxu0  ;;  %v1709_v12 = vpop.f32.mrf.mxu1  ;;  %2502 = vmatmul.mubr.f32.gmra.mxu1 %v3555_v61 }
 0x19e   : > { %v1371_v21 = vadd.f32 %v1370_v19, %v3923_v46  ;;  %v4233_v5 = vadd.f32 %v1709_v12, %v1361_v55  ;;  %2507 = vmatprep.mubr.f32.mxu1 %v2829_v9 }
 0x19f   : > { %v1376_v50 = vpop.f32.mrf.mxu0  ;;  %2211 = vmatmul.mubr.f32.gmra.mxu0 %v3584_v35  ;;  %v1711_v54 = vpop.f32.mrf.mxu1 }
 0x1a0   : > { %v1377_v25 = vadd.f32 %v1376_v50, %v3930_v15  ;;  %v4238_v37 = vadd.f32 %v1711_v54, %v1363_v2  ;;  %2216 = vmatprep.mubr.f32.mxu0 %v2829_v9 }
 0x1a1   : > { %v1378_v56 = vpop.f32.mrf.mxu0  ;;  %v1718_v14 = vpop.f32.mrf.mxu1  ;;  %2509 = vmatmul.mubr.f32.gmra.mxu1 %v3569_v30 }
 0x1a2   : > { %v1379_v61 = vadd.f32 %v1378_v56, %v3934_v52  ;;  %v4243_v46 = vadd.f32 %v1718_v14, %v1369_v29  ;;  %2514 = vmatprep.mubr.f32.mxu1 %v2829_v9 }
 0x1a3   : > { %v1384_v59 = vpop.f32.mrf.mxu0  ;;  %2218 = vmatmul.mubr.f32.gmra.mxu0 %v3590_v40  ;;  %v1720_v51 = vpop.f32.mrf.mxu1 }
 0x1a4   : > { %v1385_v15 = vadd.f32 %v1384_v59, %v3941_v3  ;;  %v4248_v43 = vadd.f32 %v1720_v51, %v1371_v21  ;;  %2223 = vmatprep.mubr.f32.mxu0 %v2829_v9 }
 0x1a5   : > { %v1386_v55 = vpop.f32.mrf.mxu0  ;;  %v1727_v57 = vpop.f32.mrf.mxu1  ;;  %2516 = vmatmul.mubr.f32.gmra.mxu1 %v3584_v35 }
 0x1a6   : > { %v1387_v30 = vadd.f32 %v1386_v55, %v3945_v16  ;;  %v4253_v52 = vadd.f32 %v1727_v57, %v1377_v25  ;;  %2521 = vmatprep.mubr.f32.mxu1 %v2829_v9 }
 0x1a7   : > { %v1392_v17 = vpop.f32.mrf.mxu0  ;;  %2225 = vmatmul.mubr.f32.gmra.mxu0 %v3603_v0  ;;  %v1729_v2 = vpop.f32.mrf.mxu1 }
 0x1a8   : > { %v1393_v3 = vadd.f32 %v1392_v17, %v3952_v36  ;;  %v4258_v8 = vadd.f32 %v1729_v2, %v1379_v61  ;;  %v4869_v17 = vld [vmem:[#allocation17_spill] sm:$0xff] }
 0x1a9   : > { %v1394_v4 = vpop.f32.mrf.mxu0  ;;  %v1736_v29 = vpop.f32.mrf.mxu1  ;;  %2523 = vmatmul.mubr.f32.gmra.mxu1 %v3590_v40 }
 0x1aa   : > { %v1395_v35 = vadd.f32 %v1394_v4, %v3956_v34  ;;  %v4262_v19 = vadd.f32 %v1736_v29, %v1385_v15  ;;  %2528 = vmatprep.mubr.f32.mxu1 %v2829_v9  ;;  %v4870_v29 = vld [vmem:[#allocation19_spill] sm:$0xff] }
 0x1ab   : > { %v1400_v16 = vpop.f32.mrf.mxu0  ;;  %v1738_v12 = vpop.f32.mrf.mxu1 }
 0x1ac   : > { %v1401_v21 = vadd.f32 %v1400_v16, %v3962_v13  ;;  %v4266_v50 = vadd.f32 %v1738_v12, %v1387_v30 }
 0x1ad   : > { %v1402_v54 = vpop.f32.mrf.mxu0  ;;  %v1745_v36 = vpop.f32.mrf.mxu1  ;;  %2530 = vmatmul.mubr.f32.gmra.mxu1 %v3603_v0 }
 0x1ae   : > { %v1403_v25 = vadd.f32 %v1402_v54, %v3966_v39  ;;  %v4270_v56 = vadd.f32 %v1745_v36, %v1393_v3 }
 0x1af   : > { %v1408_v40 = vpop.f32.mrf.mxu0  ;;  %v1747_v34 = vpop.f32.mrf.mxu1 }
 0x1b0   : > { %v1409_v14 = vadd.f32 %v1408_v40, %v3972_v10  ;;  %v4273_v61 = vadd.f32 %v1747_v34, %v1395_v35  ;;  %v4872_v40 = vld [vmem:[#allocation23_spill] sm:$0xff] }
 0x1b1   : > { %v1410_v9 = vpop.f32.mrf.mxu0  ;;  %v1754_v59 = vpop.f32.mrf.mxu1 }
 0x1b2   : > { %v1411_v13 = vadd.f32 %v1410_v9, %v3976_v44  ;;  %v4276_v51 = vadd.f32 %v1754_v59, %v1401_v21  ;;  %v4871_v21 = vld [vmem:[#allocation22_spill] sm:$0xff] }
 0x1b3   : > { %v1416_v15 = vpop.f32.mrf.mxu0  ;;  %v1756_v55 = vpop.f32.mrf.mxu1 }
 0x1b4   : > { %v1417_v0 = vadd.f32 %v1416_v15, %v3982_v63  ;;  %v4279_v57 = vadd.f32 %v1756_v55, %v1403_v25  ;;  %v4874_v15 = vld [vmem:[#allocation26_spill] sm:$0xff] }
 0x1b5   : > { %v1418_v39 = vpop.f32.mrf.mxu0  ;;  %v1763_v30 = vpop.f32.mrf.mxu1 }
 0x1b6   : > { %v1419_v2 = vadd.f32 %v1418_v39, %v4869_v17  ;;  %v4282_v3 = vadd.f32 %v1763_v30, %v1409_v14  ;;  %v4876_v17 = vld [vmem:[#allocation28_spill] sm:$0xff] }
 0x1b7   : > { %v1424_v10 = vpop.f32.mrf.mxu0  ;;  %v1765_v4 = vpop.f32.mrf.mxu1 }
 0x1b8   : > { %v1425_v35 = vadd.f32 %v1424_v10, %v4870_v29  ;;  %v4285_v16 = vadd.f32 %v1765_v4, %v1411_v13 }
 0x1b9   : > { %v1426_v44 = vpop.f32.mrf.mxu0  ;;  %v1772_v12 = vpop.f32.mrf.mxu1 }
 0x1ba   : > { %v1427_v54 = vadd.f32 %v1426_v44, %v4871_v21  ;;  %v4288_v36 = vadd.f32 %v1772_v12, %v1417_v0  ;;  %v4878_v44 = vld [vmem:[#allocation29_spill] sm:$0xff] }
 0x1bb   : > { %v1432_v63 = vpop.f32.mrf.mxu0  ;;  %v1774_v25 = vpop.f32.mrf.mxu1 }
 0x1bc   : > { %v1433_v34 = vadd.f32 %v1432_v63, %v4872_v40  ;;  %v4291_v9 = vadd.f32 %v1774_v25, %v1419_v2  ;;  %v4880_v25 = vld [vmem:[#allocation31_spill] sm:$0xff] }
 0x1bd   : > { %v1434_v14 = vpop.f32.mrf.mxu0  ;;  %v1781_v59 = vpop.f32.mrf.mxu1 }
 0x1be   : > { %4873 = vst [vmem:[#allocation13_spill] sm:$0xff] %v4291_v9  ;;  %v1435_v55 = vadd.f32 %v1434_v14, %v4874_v15  ;;  %v4294_v39 = vadd.f32 %v1781_v59, %v1425_v35  ;;  %v4882_v59 = vld [vmem:[#allocation33_spill] sm:$0xff] }
 0x1bf   : > { %v1440_v13 = vpop.f32.mrf.mxu0  ;;  %v1783_v30 = vpop.f32.mrf.mxu1 }
 0x1c0   : > { %4875 = vst [vmem:[#allocation14_spill] sm:$0xff] %v4294_v39  ;;  %v1441_v10 = vadd.f32 %v1440_v13, %v4876_v17  ;;  %v4297_v4 = vadd.f32 %v1783_v30, %v1427_v54  ;;  %v4884_v30 = vld [vmem:[#allocation35_spill] sm:$0xff] }
 0x1c1   : > { %v1442_v0 = vpop.f32.mrf.mxu0  ;;  %v1790_v29 = vpop.f32.mrf.mxu1 }
 0x1c2   : > { %4877 = vst [vmem:[#allocation15_spill] sm:$0xff] %v4297_v4  ;;  %v1443_v12 = vadd.f32 %v1442_v0, %v4878_v44  ;;  %v4300_v21 = vadd.f32 %v1790_v29, %v1433_v34  ;;  %v4886_v29 = vld [vmem:[#allocation38_spill] sm:$0xff] }
 0x1c3   : > { %v1448_v2 = vpop.f32.mrf.mxu0  ;;  %v1792_v63 = vpop.f32.mrf.mxu1 }
 0x1c4   : > { %4879 = vst [vmem:[#allocation16_spill] sm:$0xff] %v4300_v21  ;;  %v1449_v40 = vadd.f32 %v1448_v2, %v4880_v25  ;;  %v4303_v9 = vadd.f32 %v1792_v63, %v1435_v55  ;;  %v4888_v63 = vld [vmem:[#allocation40_spill] sm:$0xff] }
 0x1c5   : > { %v1450_v35 = vpop.f32.mrf.mxu0  ;;  %v1799_v14 = vpop.f32.mrf.mxu1 }
 0x1c6   : > { %4881 = vst [vmem:[#allocation18_spill] sm:$0xff] %v4303_v9  ;;  %v1451_v15 = vadd.f32 %v1450_v35, %v4882_v59  ;;  %v4306_v39 = vadd.f32 %v1799_v14, %v1441_v10  ;;  %v4890_v14 = vld [vmem:[#allocation41_spill] sm:$0xff] }
 0x1c7   : > { %v1456_v54 = vpop.f32.mrf.mxu0  ;;  %v1801_v13 = vpop.f32.mrf.mxu1 }
 0x1c8   : > { %4883 = vst [vmem:[#allocation20_spill] sm:$0xff] %v4306_v39  ;;  %v1457_v17 = vadd.f32 %v1456_v54, %v4884_v30  ;;  %v4309_v4 = vadd.f32 %v1801_v13, %v1443_v12  ;;  %v4892_v13 = vld [vmem:[#allocation42_spill] sm:$0xff] }
 0x1c9   : > { %v1458_v34 = vpop.f32.mrf.mxu0  ;;  %v1808_v0 = vpop.f32.mrf.mxu1 }
 0x1ca   : > { %4885 = vst [vmem:[#allocation21_spill] sm:$0xff] %v4309_v4  ;;  %v1459_v44 = vadd.f32 %v1458_v34, %v4886_v29  ;;  %v4312_v21 = vadd.f32 %v1808_v0, %v1449_v40  ;;  %v4894_v0 = vld [vmem:[#allocation43_spill] sm:$0xff] }
 0x1cb   : > { %v1464_v55 = vpop.f32.mrf.mxu0  ;;  %v1810_v2 = vpop.f32.mrf.mxu1 }
 0x1cc   : > { %4887 = vst [vmem:[#allocation24_spill] sm:$0xff] %v4312_v21  ;;  %v1465_v25 = vadd.f32 %v1464_v55, %v4888_v63  ;;  %v4315_v9 = vadd.f32 %v1810_v2, %v1451_v15  ;;  %v4896_v2 = vld [vmem:[#allocation5_spill] sm:$0xff] }
 0x1cd   : > { %v1466_v10 = vpop.f32.mrf.mxu0  ;;  %v1817_v35 = vpop.f32.mrf.mxu1 }
 0x1ce   : > { %4889 = vst [vmem:[#allocation25_spill] sm:$0xff] %v4315_v9  ;;  %v1467_v59 = vadd.f32 %v1466_v10, %v4890_v14  ;;  %v4318_v39 = vadd.f32 %v1817_v35, %v1457_v17  ;;  %v4898_v35 = vld [vmem:[#allocation6_spill] sm:$0xff] }
 0x1cf   : > { %v1472_v12 = vpop.f32.mrf.mxu0  ;;  %v1819_v54 = vpop.f32.mrf.mxu1 }
 0x1d0   : > { %4891 = vst [vmem:[#allocation27_spill] sm:$0xff] %v4318_v39  ;;  %v1473_v30 = vadd.f32 %v1472_v12, %v4892_v13  ;;  %v4321_v4 = vadd.f32 %v1819_v54, %v1459_v44  ;;  %v4900_v54 = vld [vmem:[#allocation7_spill] sm:$0xff] }
 0x1d1   : > { %v1474_v40 = vpop.f32.mrf.mxu0  ;;  %v1826_v34 = vpop.f32.mrf.mxu1 }
 0x1d2   : > { %4893 = vst [vmem:[#allocation30_spill] sm:$0xff] %v4321_v4  ;;  %v1475_v29 = vadd.f32 %v1474_v40, %v4894_v0  ;;  %v4324_v21 = vadd.f32 %v1826_v34, %v1465_v25  ;;  %v4902_v34 = vld [vmem:[#allocation8_spill] sm:$0xff] }
 0x1d3   : > { %v1480_v15 = vpop.f32.mrf.mxu0  ;;  %v1828_v55 = vpop.f32.mrf.mxu1 }
 0x1d4   : > { %4895 = vst [vmem:[#allocation32_spill] sm:$0xff] %v4324_v21  ;;  %v1481_v63 = vadd.f32 %v1480_v15, %v4896_v2  ;;  %v4327_v9 = vadd.f32 %v1828_v55, %v1467_v59  ;;  %v4904_v55 = vld [vmem:[#allocation9_spill] sm:$0xff] }
 0x1d5   : > { %v1482_v17 = vpop.f32.mrf.mxu0  ;;  %v1835_v10 = vpop.f32.mrf.mxu1 }
 0x1d6   : > { %4897 = vst [vmem:[#allocation34_spill] sm:$0xff] %v4327_v9  ;;  %v1483_v14 = vadd.f32 %v1482_v17, %v4898_v35  ;;  %v4330_v39 = vadd.f32 %v1835_v10, %v1473_v30  ;;  %v4905_v10 = vld [vmem:[#allocation10_spill] sm:$0xff] }
 0x1d7   : > { %v1488_v44 = vpop.f32.mrf.mxu0  ;;  %v1837_v12 = vpop.f32.mrf.mxu1 }
 0x1d8   : > { %4899 = vst [vmem:[#allocation36_spill] sm:$0xff] %v4330_v39  ;;  %v1489_v13 = vadd.f32 %v1488_v44, %v4900_v54  ;;  %v4333_v4 = vadd.f32 %v1837_v12, %v1475_v29  ;;  %v4906_v12 = vld [vmem:[#allocation11_spill] sm:$0xff] }
 0x1d9   : > { %v1490_v25 = vpop.f32.mrf.mxu0  ;;  %v1844_v40 = vpop.f32.mrf.mxu1 }
 0x1da   : > { %4901 = vst [vmem:[#allocation37_spill] sm:$0xff] %v4333_v4  ;;  %v1491_v0 = vadd.f32 %v1490_v25, %v4902_v34  ;;  %v4336_v21 = vadd.f32 %v1844_v40, %v1481_v63  ;;  %v4907_v40 = vld [vmem:[#allocation12_spill] sm:$0xff] }
 0x1db   : > { %v1496_v59 = vpop.f32.mrf.mxu0  ;;  %v1846_v15 = vpop.f32.mrf.mxu1 }
 0x1dc   : > { %4903 = vst [vmem:[#allocation39_spill] sm:$0xff] %v4336_v21  ;;  %v1497_v2 = vadd.f32 %v1496_v59, %v4904_v55  ;;  %v4339_v9 = vadd.f32 %v1846_v15, %v1483_v14 }
 0x1dd   : > { %v1498_v30 = vpop.f32.mrf.mxu0  ;;  %v1853_v17 = vpop.f32.mrf.mxu1 }
 0x1de   : > { %v1499_v35 = vadd.f32 %v1498_v30, %v4905_v10  ;;  %v4342_v39 = vadd.f32 %v1853_v17, %v1489_v13 }
 0x1df   : > { %v1504_v29 = vpop.f32.mrf.mxu0  ;;  %v1855_v44 = vpop.f32.mrf.mxu1 }
 0x1e0   : > { %v1505_v54 = vadd.f32 %v1504_v29, %v4906_v12  ;;  %v4345_v4 = vadd.f32 %v1855_v44, %v1491_v0 }
 0x1e1   : > { %v1506_v63 = vpop.f32.mrf.mxu0  ;;  %v1862_v25 = vpop.f32.mrf.mxu1 }
 0x1e2   : > { %v1507_v34 = vadd.f32 %v1506_v63, %v4907_v40  ;;  %v4348_v21 = vadd.f32 %v1862_v25, %v1497_v2 }
 0x1e3   : > { %v1512_v14 = vpop.f32.mrf.mxu0  ;;  %v1864_v59 = vpop.f32.mrf.mxu1 }
 0x1e4   : > { %v1513_v15 = vadd.f32 %v1512_v14, %v4102_v38  ;;  %v4351_v55 = vadd.f32 %v1864_v59, %v1499_v35 }
 0x1e5   : > { %v1514_v13 = vpop.f32.mrf.mxu0  ;;  %v1871_v30 = vpop.f32.mrf.mxu1 }
 0x1e6   : > { %v1515_v17 = vadd.f32 %v1514_v13, %v4107_v60  ;;  %v4354_v10 = vadd.f32 %v1871_v30, %v1505_v54 }
 0x1e7   : > { %v1520_v0 = vpop.f32.mrf.mxu0  ;;  %v1873_v29 = vpop.f32.mrf.mxu1 }
 0x1e8   : > { %v1521_v44 = vadd.f32 %v1520_v0, %v4113_v31  ;;  %v4357_v12 = vadd.f32 %v1873_v29, %v1507_v34 }
 0x1e9   : > { %v1522_v2 = vpop.f32.mrf.mxu0  ;;  %v1880_v63 = vpop.f32.mrf.mxu1 }
 0x1ea   : > { %v1523_v38 = vadd.f32 %v1522_v2, %v4118_v58  ;;  %v4360_v35 = vadd.f32 %v1880_v63, %v1513_v15 }
 0x1eb   : > { %v2009_v25 = vpop.f32.mrf.mxu0  ;;  %v1882_v40 = vpop.f32.mrf.mxu1 }
 0x1ec   : > { %v4362_v14 = vadd.f32 %v1882_v40, %v1515_v17  ;;  %v2010_v13 = vadd.f32 %v2009_v25, %v4123_v11 }
 0x1ed   : > { %v2011_v60 = vpop.f32.mrf.mxu0  ;;  %v1889_v54 = vpop.f32.mrf.mxu1 }
 0x1ee   : > { %v4365_v59 = vadd.f32 %v1889_v54, %v1521_v44  ;;  %v2012_v17 = vadd.f32 %v2011_v60, %v4128_v18 }
 0x1ef   : > { %v2016_v31 = vpop.f32.mrf.mxu0  ;;  %v1891_v34 = vpop.f32.mrf.mxu1 }
 0x1f0   : > { %v4368_v30 = vadd.f32 %v1891_v34, %v1523_v38  ;;  %v2017_v11 = vadd.f32 %v2016_v31, %v4133_v1 }
 0x1f1   : > { %v2018_v58 = vpop.f32.mrf.mxu0  ;;  %v2314_v15 = vpop.f32.mrf.mxu1 }
 0x1f2   : > { %v2315_v0 = vadd.f32 %v2314_v15, %v2010_v13  ;;  %v2019_v25 = vadd.f32 %v2018_v58, %v4138_v49 }
 0x1f3   : > { %v2023_v29 = vpop.f32.mrf.mxu0  ;;  %v2316_v44 = vpop.f32.mrf.mxu1 }
 0x1f4   : > { %2536 = vst.msk [vmem:[%s4377_s12] sm:$0xff] %vm273_vm0, %v2315_v0  ;;  %v2317_v2 = vadd.f32 %v2316_v44, %v2012_v17  ;;  %v2024_v54 = vadd.f32 %v2023_v29, %v4143_v24 }
 0x1f5   : > { %v2025_v63 = vpop.f32.mrf.mxu0  ;;  %v2321_v38 = vpop.f32.mrf.mxu1 }
 0x1f6   : > { %2568 = vst [vmem:[%s4384_s7] sm:$0xff] %v2317_v2  ;;  %v2322_v18 = vadd.f32 %v2321_v38, %v2017_v11  ;;  %v2026_v13 = vadd.f32 %v2025_v63, %v4148_v28 }
 0x1f7   : > { %v2030_v40 = vpop.f32.mrf.mxu0  ;;  %v2323_v60 = vpop.f32.mrf.mxu1 }
 0x1f8   : > { %2537 = vst.msk [vmem:[%s4377_s12 + $0x8] sm:$0xff] %vm273_vm0, %v2322_v18  ;;  %v2324_v1 = vadd.f32 %v2323_v60, %v2019_v25  ;;  %v2031_v17 = vadd.f32 %v2030_v40, %v4153_v48 }
 0x1f9   : > { %v2032_v31 = vpop.f32.mrf.mxu0  ;;  %v2328_v34 = vpop.f32.mrf.mxu1 }
 0x1fa   : > { %2569 = vst [vmem:[%s4384_s7 + $0x8] sm:$0xff] %v2324_v1  ;;  %v2329_v49 = vadd.f32 %v2328_v34, %v2024_v54  ;;  %v2033_v44 = vadd.f32 %v2032_v31, %v4158_v33 }
 0x1fb   : > { %v2037_v58 = vpop.f32.mrf.mxu0  ;;  %v2330_v15 = vpop.f32.mrf.mxu1 }
 0x1fc   : > { %2538 = vst.msk [vmem:[%s4377_s12 + $0x10] sm:$0xff] %vm273_vm0, %v2329_v49  ;;  %v2331_v0 = vadd.f32 %v2330_v15, %v2026_v13  ;;  %v2038_v63 = vadd.f32 %v2037_v58, %v4163_v32 }
 0x1fd   : > { %v2039_v24 = vpop.f32.mrf.mxu0  ;;  %v2335_v29 = vpop.f32.mrf.mxu1 }
 0x1fe   : > { %2570 = vst [vmem:[%s4384_s7 + $0x10] sm:$0xff] %v2331_v0  ;;  %v2336_v11 = vadd.f32 %v2335_v29, %v2031_v17  ;;  %v2040_v18 = vadd.f32 %v2039_v24, %v4168_v6 }
 0x1ff   : > { %v2044_v2 = vpop.f32.mrf.mxu0  ;;  %v2337_v28 = vpop.f32.mrf.mxu1 }
 0x200   : > { %2539 = vst.msk [vmem:[%s4377_s12 + $0x18] sm:$0xff] %vm273_vm0, %v2336_v11  ;;  %v2338_v38 = vadd.f32 %v2337_v28, %v2033_v44  ;;  %v2045_v54 = vadd.f32 %v2044_v2, %v4173_v62 }
 0x201   : > { %v2046_v48 = vpop.f32.mrf.mxu0  ;;  %v2342_v25 = vpop.f32.mrf.mxu1 }
 0x202   : > { %2571 = vst [vmem:[%s4384_s7 + $0x18] sm:$0xff] %v2338_v38  ;;  %v2343_v40 = vadd.f32 %v2342_v25, %v2038_v63  ;;  %v2047_v34 = vadd.f32 %v2046_v48, %v4178_v47 }
 0x203   : > { %v2051_v60 = vpop.f32.mrf.mxu0  ;;  %v2344_v33 = vpop.f32.mrf.mxu1 }
 0x204   : > { %2540 = vst.msk [vmem:[%s4377_s12 + $0x20] sm:$0xff] %vm273_vm0, %v2343_v40  ;;  %v2345_v1 = vadd.f32 %v2344_v33, %v2040_v18  ;;  %v2052_v58 = vadd.f32 %v2051_v60, %v4183_v20 }
 0x205   : > { %v2053_v32 = vpop.f32.mrf.mxu0  ;;  %v2349_v31 = vpop.f32.mrf.mxu1 }
 0x206   : > { %2572 = vst [vmem:[%s4384_s7 + $0x20] sm:$0xff] %v2345_v1  ;;  %v2350_v13 = vadd.f32 %v2349_v31, %v2045_v54  ;;  %v2054_v0 = vadd.f32 %v2053_v32, %v4188_v26 }
 0x207   : > { %v2058_v49 = vpop.f32.mrf.mxu0  ;;  %v2351_v6 = vpop.f32.mrf.mxu1 }
 0x208   : > { %2541 = vst.msk [vmem:[%s4377_s12 + $0x28] sm:$0xff] %vm273_vm0, %v2350_v13  ;;  %v2352_v15 = vadd.f32 %v2351_v6, %v2047_v34  ;;  %v2059_v44 = vadd.f32 %v2058_v49, %v4193_v53 }
 0x209   : > { %v2060_v62 = vpop.f32.mrf.mxu0  ;;  %v2356_v17 = vpop.f32.mrf.mxu1 }
 0x20a   : > { %2573 = vst [vmem:[%s4384_s7 + $0x28] sm:$0xff] %v2352_v15  ;;  %v2357_v24 = vadd.f32 %v2356_v17, %v2052_v58  ;;  %v2061_v28 = vadd.f32 %v2060_v62, %v4198_v41 }
 0x20b   : > { %v2065_v29 = vpop.f32.mrf.mxu0  ;;  %v2358_v47 = vpop.f32.mrf.mxu1 }
 0x20c   : > { %2542 = vst.msk [vmem:[%s4377_s12 + $0x30] sm:$0xff] %vm273_vm0, %v2357_v24  ;;  %v2359_v11 = vadd.f32 %v2358_v47, %v2054_v0  ;;  %v2066_v48 = vadd.f32 %v2065_v29, %v4203_v22 }
 0x20d   : > { %v2067_v20 = vpop.f32.mrf.mxu0  ;;  %v2363_v2 = vpop.f32.mrf.mxu1 }
 0x20e   : > { %2574 = vst [vmem:[%s4384_s7 + $0x30] sm:$0xff] %v2359_v11  ;;  %v2364_v63 = vadd.f32 %v2363_v2, %v2059_v44  ;;  %v2068_v40 = vadd.f32 %v2067_v20, %v4208_v7 }
 0x20f   : > { %v2072_v38 = vpop.f32.mrf.mxu0  ;;  %v2365_v26 = vpop.f32.mrf.mxu1 }
 0x210   : > { %2543 = vst.msk [vmem:[%s4377_s12 + $0x38] sm:$0xff] %vm273_vm0, %v2364_v63  ;;  %v2366_v25 = vadd.f32 %v2365_v26, %v2061_v28  ;;  %v2073_v54 = vadd.f32 %v2072_v38, %v4213_v45 }
 0x211   : > { %v2074_v53 = vpop.f32.mrf.mxu0  ;;  %v2370_v18 = vpop.f32.mrf.mxu1 }
 0x212   : > { %2575 = vst [vmem:[%s4384_s7 + $0x38] sm:$0xff] %v2366_v25  ;;  %v2371_v60 = vadd.f32 %v2370_v18, %v2066_v48  ;;  %v2075_v31 = vadd.f32 %v2074_v53, %v4218_v23 }
 0x213   : > { %v2079_v33 = vpop.f32.mrf.mxu0  ;;  %v2372_v41 = vpop.f32.mrf.mxu1 }
 0x214   : > { %2544 = vst.msk [vmem:[%s4377_s12 + $0x40] sm:$0xff] %vm273_vm0, %v2371_v60  ;;  %v2373_v1 = vadd.f32 %v2372_v41, %v2068_v40  ;;  %v2080_v49 = vadd.f32 %v2079_v33, %v4223_v27 }
 0x215   : > { %v2081_v22 = vpop.f32.mrf.mxu0  ;;  %v2377_v32 = vpop.f32.mrf.mxu1 }
 0x216   : > { %2576 = vst [vmem:[%s4384_s7 + $0x40] sm:$0xff] %v2373_v1  ;;  %v2378_v34 = vadd.f32 %v2377_v32, %v2073_v54  ;;  %v2082_v15 = vadd.f32 %v2081_v22, %v4228_v42 }
 0x217   : > { %v2086_v13 = vpop.f32.mrf.mxu0  ;;  %v2379_v7 = vpop.f32.mrf.mxu1 }
 0x218   : > { %2545 = vst.msk [vmem:[%s4377_s12 + $0x48] sm:$0xff] %vm273_vm0, %v2378_v34  ;;  %v2380_v6 = vadd.f32 %v2379_v7, %v2075_v31  ;;  %v2087_v0 = vadd.f32 %v2086_v13, %v4233_v5 }
 0x219   : > { %v2088_v45 = vpop.f32.mrf.mxu0  ;;  %v2384_v58 = vpop.f32.mrf.mxu1 }
 0x21a   : > { %2577 = vst [vmem:[%s4384_s7 + $0x48] sm:$0xff] %v2380_v6  ;;  %v2385_v62 = vadd.f32 %v2384_v58, %v2080_v49  ;;  %v2089_v47 = vadd.f32 %v2088_v45, %v4238_v37 }
 0x21b   : > { %v2093_v17 = vpop.f32.mrf.mxu0  ;;  %v2386_v23 = vpop.f32.mrf.mxu1 }
 0x21c   : > { %2546 = vst.msk [vmem:[%s4377_s12 + $0x50] sm:$0xff] %vm273_vm0, %v2385_v62  ;;  %v2387_v24 = vadd.f32 %v2386_v23, %v2082_v15  ;;  %v2094_v20 = vadd.f32 %v2093_v17, %v4243_v46 }
 0x21d   : > { %v2095_v27 = vpop.f32.mrf.mxu0  ;;  %v2391_v29 = vpop.f32.mrf.mxu1 }
 0x21e   : > { %2578 = vst [vmem:[%s4384_s7 + $0x50] sm:$0xff] %v2387_v24  ;;  %v2392_v44 = vadd.f32 %v2391_v29, %v2087_v0  ;;  %v2096_v63 = vadd.f32 %v2095_v27, %v4248_v43 }
 0x21f   : > { %v2100_v11 = vpop.f32.mrf.mxu0  ;;  %v2393_v42 = vpop.f32.mrf.mxu1 }
 0x220   : > { %2547 = vst.msk [vmem:[%s4377_s12 + $0x58] sm:$0xff] %vm273_vm0, %v2392_v44  ;;  %v2394_v2 = vadd.f32 %v2393_v42, %v2089_v47  ;;  %v2101_v48 = vadd.f32 %v2100_v11, %v4253_v52 }
 0x221   : > { %v2102_v5 = vpop.f32.mrf.mxu0  ;;  %v2398_v28 = vpop.f32.mrf.mxu1 }
 0x222   : > { %2579 = vst [vmem:[%s4384_s7 + $0x58] sm:$0xff] %v2394_v2  ;;  %v2399_v38 = vadd.f32 %v2398_v28, %v2094_v20  ;;  %v2103_v18 = vadd.f32 %v2102_v5, %v4258_v8  ;;  %v4908_v2 = vld [vmem:[#allocation13_spill] sm:$0xff] }
 0x223   : > { %v2107_v26 = vpop.f32.mrf.mxu0  ;;  %v2400_v37 = vpop.f32.mrf.mxu1 }
 0x224   : > { %2548 = vst.msk [vmem:[%s4377_s12 + $0x60] sm:$0xff] %vm273_vm0, %v2399_v38  ;;  %v2401_v25 = vadd.f32 %v2400_v37, %v2096_v63  ;;  %v2108_v33 = vadd.f32 %v2107_v26, %v4262_v19  ;;  %v4909_v38 = vld [vmem:[#allocation14_spill] sm:$0xff] }
 0x225   : > { %v2109_v46 = vpop.f32.mrf.mxu0  ;;  %v2405_v53 = vpop.f32.mrf.mxu1 }
 0x226   : > { %2580 = vst [vmem:[%s4384_s7 + $0x60] sm:$0xff] %v2401_v25  ;;  %v2406_v40 = vadd.f32 %v2405_v53, %v2101_v48  ;;  %v2110_v1 = vadd.f32 %v2109_v46, %v4266_v50  ;;  %v4910_v25 = vld [vmem:[#allocation15_spill] sm:$0xff] }
 0x227   : > { %v2114_v60 = vpop.f32.mrf.mxu0  ;;  %v2407_v43 = vpop.f32.mrf.mxu1 }
 0x228   : > { %2549 = vst.msk [vmem:[%s4377_s12 + $0x68] sm:$0xff] %vm273_vm0, %v2406_v40  ;;  %v2408_v41 = vadd.f32 %v2407_v43, %v2103_v18  ;;  %v2115_v31 = vadd.f32 %v2114_v60, %v4270_v56  ;;  %v4911_v60 = vld [vmem:[#allocation16_spill] sm:$0xff] }
 0x229   : > { %v2116_v52 = vpop.f32.mrf.mxu0  ;;  %v2412_v54 = vpop.f32.mrf.mxu1 }
 0x22a   : > { %2581 = vst [vmem:[%s4384_s7 + $0x68] sm:$0xff] %v2408_v41  ;;  %v2413_v22 = vadd.f32 %v2412_v54, %v2108_v33  ;;  %v2117_v7 = vadd.f32 %v2116_v52, %v4273_v61  ;;  %v4912_v54 = vld [vmem:[#allocation18_spill] sm:$0xff] }
 0x22b   : > { %v2121_v32 = vpop.f32.mrf.mxu0  ;;  %v2414_v8 = vpop.f32.mrf.mxu1 }
 0x22c   : > { %2550 = vst.msk [vmem:[%s4377_s12 + $0x70] sm:$0xff] %vm273_vm0, %v2413_v22  ;;  %v2415_v34 = vadd.f32 %v2414_v8, %v2110_v1  ;;  %v2122_v45 = vadd.f32 %v2121_v32, %v4276_v51 }
 0x22d   : > { %v2123_v19 = vpop.f32.mrf.mxu0  ;;  %v2419_v13 = vpop.f32.mrf.mxu1 }
 0x22e   : > { %2582 = vst [vmem:[%s4384_s7 + $0x70] sm:$0xff] %v2415_v34  ;;  %v2420_v49 = vadd.f32 %v2419_v13, %v2115_v31  ;;  %v2124_v62 = vadd.f32 %v2123_v19, %v4279_v57  ;;  %v4913_v31 = vld [vmem:[#allocation20_spill] sm:$0xff] }
 0x22f   : > { %v2128_v6 = vpop.f32.mrf.mxu0  ;;  %v2421_v50 = vpop.f32.mrf.mxu1 }
 0x230   : > { %2551 = vst.msk [vmem:[%s4377_s12 + $0x78] sm:$0xff] %vm273_vm0, %v2420_v49  ;;  %v2422_v58 = vadd.f32 %v2421_v50, %v2117_v7  ;;  %v2129_v0 = vadd.f32 %v2128_v6, %v4282_v3  ;;  %v4914_v49 = vld [vmem:[#allocation21_spill] sm:$0xff] }
 0x231   : > { %v2130_v56 = vpop.f32.mrf.mxu0  ;;  %v2426_v15 = vpop.f32.mrf.mxu1 }
 0x232   : > { %2583 = vst [vmem:[%s4384_s7 + $0x78] sm:$0xff] %v2422_v58  ;;  %v2427_v17 = vadd.f32 %v2426_v15, %v2122_v45  ;;  %v2131_v29 = vadd.f32 %v2130_v56, %v4285_v16  ;;  %v4915_v56 = vld [vmem:[#allocation24_spill] sm:$0xff] }
 0x233   : > { %v2135_v23 = vpop.f32.mrf.mxu0  ;;  %v2428_v61 = vpop.f32.mrf.mxu1 }
 0x234   : > { %2552 = vst.msk [vmem:[%s4377_s12 + $0x80] sm:$0xff] %vm273_vm0, %v2427_v17  ;;  %v2429_v24 = vadd.f32 %v2428_v61, %v2124_v62  ;;  %v2136_v11 = vadd.f32 %v2135_v23, %v4288_v36  ;;  %v4916_v61 = vld [vmem:[#allocation25_spill] sm:$0xff] }
 0x235   : > { %v2137_v51 = vpop.f32.mrf.mxu0  ;;  %v2433_v27 = vpop.f32.mrf.mxu1 }
 0x236   : > { %2584 = vst [vmem:[%s4384_s7 + $0x80] sm:$0xff] %v2429_v24  ;;  %v2434_v47 = vadd.f32 %v2433_v27, %v2129_v0  ;;  %v2138_v5 = vadd.f32 %v2137_v51, %v4908_v2 }
 0x237   : > { %v2142_v44 = vpop.f32.mrf.mxu0  ;;  %v2435_v57 = vpop.f32.mrf.mxu1 }
 0x238   : > { %2553 = vst.msk [vmem:[%s4377_s12 + $0x88] sm:$0xff] %vm273_vm0, %v2434_v47  ;;  %v2436_v42 = vadd.f32 %v2435_v57, %v2131_v29  ;;  %v2143_v26 = vadd.f32 %v2142_v44, %v4909_v38  ;;  %v4917_v29 = vld [vmem:[#allocation27_spill] sm:$0xff] }
 0x239   : > { %v2144_v3 = vpop.f32.mrf.mxu0  ;;  %v2440_v20 = vpop.f32.mrf.mxu1 }
 0x23a   : > { %2585 = vst [vmem:[%s4384_s7 + $0x88] sm:$0xff] %v2436_v42  ;;  %v2441_v28 = vadd.f32 %v2440_v20, %v2136_v11  ;;  %v2145_v46 = vadd.f32 %v2144_v3, %v4910_v25  ;;  %v4918_v42 = vld [vmem:[#allocation30_spill] sm:$0xff] }
 0x23b   : > { %v2149_v63 = vpop.f32.mrf.mxu0  ;;  %v2442_v16 = vpop.f32.mrf.mxu1 }
 0x23c   : > { %2554 = vst.msk [vmem:[%s4377_s12 + $0x90] sm:$0xff] %vm273_vm0, %v2441_v28  ;;  %v2443_v37 = vadd.f32 %v2442_v16, %v2138_v5  ;;  %v2150_v43 = vadd.f32 %v2149_v63, %v4911_v60  ;;  %v4919_v28 = vld [vmem:[#allocation32_spill] sm:$0xff] }
 0x23d   : > { %v2151_v36 = vpop.f32.mrf.mxu0  ;;  %v2447_v48 = vpop.f32.mrf.mxu1 }
 0x23e   : > { %2586 = vst [vmem:[%s4384_s7 + $0x90] sm:$0xff] %v2443_v37  ;;  %v2448_v53 = vadd.f32 %v2447_v48, %v2143_v26  ;;  %v2152_v1 = vadd.f32 %v2151_v36, %v4912_v54  ;;  %v4920_v37 = vld [vmem:[#allocation34_spill] sm:$0xff] }
 0x23f   : > { %v2156_v18 = vpop.f32.mrf.mxu0  ;;  %v2449_v40 = vpop.f32.mrf.mxu1 }
 0x240   : > { %2555 = vst.msk [vmem:[%s4377_s12 + $0x98] sm:$0xff] %vm273_vm0, %v2448_v53  ;;  %v2450_v33 = vadd.f32 %v2449_v40, %v2145_v46  ;;  %v2157_v34 = vadd.f32 %v2156_v18, %v4913_v31  ;;  %v4921_v53 = vld [vmem:[#allocation36_spill] sm:$0xff] }
 0x241   : > { %v2158_v41 = vpop.f32.mrf.mxu0  ;;  %v2454_v52 = vpop.f32.mrf.mxu1 }
 0x242   : > { %2587 = vst [vmem:[%s4384_s7 + $0x98] sm:$0xff] %v2450_v33  ;;  %v2455_v22 = vadd.f32 %v2454_v52, %v2150_v43  ;;  %v2159_v6 = vadd.f32 %v2158_v41, %v4914_v49  ;;  %v4922_v33 = vld [vmem:[#allocation37_spill] sm:$0xff] }
 0x243   : > { %v2163_v32 = vpop.f32.mrf.mxu0  ;;  %v2456_v8 = vpop.f32.mrf.mxu1 }
 0x244   : > { %2556 = vst.msk [vmem:[%s4377_s12 + $0xa0] sm:$0xff] %vm273_vm0, %v2455_v22  ;;  %v2457_v19 = vadd.f32 %v2456_v8, %v2152_v1  ;;  %v2164_v15 = vadd.f32 %v2163_v32, %v4915_v56  ;;  %v4923_v22 = vld [vmem:[#allocation39_spill] sm:$0xff] }
 0x245   : > { %v2165_v13 = vpop.f32.mrf.mxu0  ;;  %v2461_v7 = vpop.f32.mrf.mxu1 }
 0x246   : > { %2588 = vst [vmem:[%s4384_s7 + $0xa0] sm:$0xff] %v2457_v19  ;;  %v2462_v50 = vadd.f32 %v2461_v7, %v2157_v34  ;;  %v2166_v0 = vadd.f32 %v2165_v13, %v4916_v61 }
 0x247   : > { %v2170_v45 = vpop.f32.mrf.mxu0  ;;  %v2463_v58 = vpop.f32.mrf.mxu1 }
 0x248   : > { %2557 = vst.msk [vmem:[%s4377_s12 + $0xa8] sm:$0xff] %vm273_vm0, %v2462_v50  ;;  %v2464_v62 = vadd.f32 %v2463_v58, %v2159_v6  ;;  %v2171_v47 = vadd.f32 %v2170_v45, %v4917_v29 }
 0x249   : > { %v2172_v17 = vpop.f32.mrf.mxu0  ;;  %v2468_v23 = vpop.f32.mrf.mxu1 }
 0x24a   : > { %2589 = vst [vmem:[%s4384_s7 + $0xa8] sm:$0xff] %v2464_v62  ;;  %v2469_v24 = vadd.f32 %v2468_v23, %v2164_v15  ;;  %v2173_v3 = vadd.f32 %v2172_v17, %v4918_v42 }
 0x24b   : > { %v2177_v51 = vpop.f32.mrf.mxu0  ;;  %v2470_v27 = vpop.f32.mrf.mxu1 }
 0x24c   : > { %2558 = vst.msk [vmem:[%s4377_s12 + $0xb0] sm:$0xff] %vm273_vm0, %v2469_v24  ;;  %v2471_v44 = vadd.f32 %v2470_v27, %v2166_v0  ;;  %v2178_v63 = vadd.f32 %v2177_v51, %v4919_v28 }
 0x24d   : > { %v2179_v57 = vpop.f32.mrf.mxu0  ;;  %v2475_v11 = vpop.f32.mrf.mxu1 }
 0x24e   : > { %2590 = vst [vmem:[%s4384_s7 + $0xb0] sm:$0xff] %v2471_v44  ;;  %v2476_v20 = vadd.f32 %v2475_v11, %v2171_v47  ;;  %v2180_v36 = vadd.f32 %v2179_v57, %v4920_v37 }
 0x24f   : > { %v2184_v2 = vpop.f32.mrf.mxu0  ;;  %v2477_v5 = vpop.f32.mrf.mxu1 }
 0x250   : > { %2559 = vst.msk [vmem:[%s4377_s12 + $0xb8] sm:$0xff] %vm273_vm0, %v2476_v20  ;;  %v2478_v16 = vadd.f32 %v2477_v5, %v2173_v3  ;;  %v2185_v18 = vadd.f32 %v2184_v2, %v4921_v53 }
 0x251   : > { %v2186_v38 = vpop.f32.mrf.mxu0  ;;  %v2482_v26 = vpop.f32.mrf.mxu1 }
 0x252   : > { %2591 = vst [vmem:[%s4384_s7 + $0xb8] sm:$0xff] %v2478_v16  ;;  %v2483_v48 = vadd.f32 %v2482_v26, %v2178_v63  ;;  %v2187_v41 = vadd.f32 %v2186_v38, %v4922_v33 }
 0x253   : > { %v2191_v25 = vpop.f32.mrf.mxu0  ;;  %v2484_v46 = vpop.f32.mrf.mxu1 }
 0x254   : > { %2560 = vst.msk [vmem:[%s4377_s12 + $0xc0] sm:$0xff] %vm273_vm0, %v2483_v48  ;;  %v2485_v40 = vadd.f32 %v2484_v46, %v2180_v36  ;;  %v2192_v32 = vadd.f32 %v2191_v25, %v4923_v22 }
 0x255   : > { %v2193_v60 = vpop.f32.mrf.mxu0  ;;  %v2489_v43 = vpop.f32.mrf.mxu1 }
 0x256   : > { %2592 = vst [vmem:[%s4384_s7 + $0xc0] sm:$0xff] %v2485_v40  ;;  %v2490_v52 = vadd.f32 %v2489_v43, %v2185_v18  ;;  %v2194_v19 = vadd.f32 %v2193_v60, %v4339_v9 }
 0x257   : > { %v2198_v54 = vpop.f32.mrf.mxu0  ;;  %v2491_v1 = vpop.f32.mrf.mxu1 }
 0x258   : > { %2561 = vst.msk [vmem:[%s4377_s12 + $0xc8] sm:$0xff] %vm273_vm0, %v2490_v52  ;;  %v2492_v8 = vadd.f32 %v2491_v1, %v2187_v41  ;;  %v2199_v6 = vadd.f32 %v2198_v54, %v4342_v39 }
 0x259   : > { %v2200_v31 = vpop.f32.mrf.mxu0  ;;  %v2496_v34 = vpop.f32.mrf.mxu1 }
 0x25a   : > { %2593 = vst [vmem:[%s4384_s7 + $0xc8] sm:$0xff] %v2492_v8  ;;  %v2497_v13 = vadd.f32 %v2496_v34, %v2192_v32  ;;  %v2201_v56 = vadd.f32 %v2200_v31, %v4345_v4 }
 0x25b   : > { %v2205_v7 = vpop.f32.mrf.mxu0  ;;  %v2498_v49 = vpop.f32.mrf.mxu1 }
 0x25c   : > { %2562 = vst.msk [vmem:[%s4377_s12 + $0xd0] sm:$0xff] %vm273_vm0, %v2497_v13  ;;  %v2499_v50 = vadd.f32 %v2498_v49, %v2194_v19  ;;  %v2206_v17 = vadd.f32 %v2205_v7, %v4348_v21 }
 0x25d   : > { %v2207_v45 = vpop.f32.mrf.mxu0  ;;  %v2503_v58 = vpop.f32.mrf.mxu1 }
 0x25e   : > { %2594 = vst [vmem:[%s4384_s7 + $0xd0] sm:$0xff] %v2499_v50  ;;  %v2504_v15 = vadd.f32 %v2503_v58, %v2199_v6  ;;  %v2208_v0 = vadd.f32 %v2207_v45, %v4351_v55 }
 0x25f   : > { %v2212_v62 = vpop.f32.mrf.mxu0  ;;  %v2505_v9 = vpop.f32.mrf.mxu1 }
 0x260   : > { %2563 = vst.msk [vmem:[%s4377_s12 + $0xd8] sm:$0xff] %vm273_vm0, %v2504_v15  ;;  %v2506_v23 = vadd.f32 %v2505_v9, %v2201_v56  ;;  %v2213_v27 = vadd.f32 %v2212_v62, %v4354_v10 }
 0x261   : > { %v2214_v39 = vpop.f32.mrf.mxu0  ;;  %v2510_v61 = vpop.f32.mrf.mxu1 }
 0x262   : > { %2595 = vst [vmem:[%s4384_s7 + $0xd8] sm:$0xff] %v2506_v23  ;;  %v2511_v24 = vadd.f32 %v2510_v61, %v2206_v17  ;;  %v2215_v44 = vadd.f32 %v2214_v39, %v4357_v12 }
 0x263   : > { %v2219_v51 = vpop.f32.mrf.mxu0  ;;  %v2512_v4 = vpop.f32.mrf.mxu1 }
 0x264   : > { %2564 = vst.msk [vmem:[%s4377_s12 + $0xe0] sm:$0xff] %vm273_vm0, %v2511_v24  ;;  %v2513_v29 = vadd.f32 %v2512_v4, %v2208_v0  ;;  %v2220_v42 = vadd.f32 %v2219_v51, %v4360_v35 }
 0x265   : > { %v2221_v21 = vpop.f32.mrf.mxu0  ;;  %v2517_v47 = vpop.f32.mrf.mxu1 }
 0x266   : > { %2596 = vst [vmem:[%s4384_s7 + $0xe0] sm:$0xff] %v2513_v29  ;;  %v2518_v57 = vadd.f32 %v2517_v47, %v2213_v27  ;;  %v2222_v20 = vadd.f32 %v2221_v21, %v4362_v14 }
 0x267   : > { %v2226_v55 = vpop.f32.mrf.mxu0  ;;  %v2519_v11 = vpop.f32.mrf.mxu1 }
 0x268   : > { %2565 = vst.msk [vmem:[%s4377_s12 + $0xe8] sm:$0xff] %vm273_vm0, %v2518_v57  ;;  %v2520_v10 = vadd.f32 %v2519_v11, %v2215_v44  ;;  %v2227_v28 = vadd.f32 %v2226_v55, %v4365_v59 }
 0x269   : > { %v2524_v3 = vpop.f32.mrf.mxu1  ;;  %v2228_v5 = vpop.f32.mrf.mxu0 }
 0x26a   : > { %2597 = vst [vmem:[%s4384_s7 + $0xe8] sm:$0xff] %v2520_v10  ;;  %v2525_v2 = vadd.f32 %v2524_v3, %v2220_v42  ;;  %v2229_v16 = vadd.f32 %v2228_v5, %v4368_v30 }
 0x26b   : > { %v2526_v12 = vpop.f32.mrf.mxu1 }
 0x26c   : > { %2566 = vst.msk [vmem:[%s4377_s12 + $0xf0] sm:$0xff] %vm273_vm0, %v2525_v2  ;;  %v2527_v63 = vadd.f32 %v2526_v12, %v2222_v20 }
 0x26d   : > { %v2531_v35 = vpop.f32.mrf.mxu1 }
 0x26e   : > { %2598 = vst [vmem:[%s4384_s7 + $0xf0] sm:$0xff] %v2527_v63  ;;  %v2532_v14 = vadd.f32 %v2531_v35, %v2227_v28 }
 0x26f   : > { %v2533_v38 = vpop.f32.mrf.mxu1 }
 0x270   : > { %2567 = vst.msk [vmem:[%s4377_s12 + $0xf8] sm:$0xff] %vm273_vm0, %v2532_v14  ;;  %v2534_v59 = vadd.f32 %v2533_v38, %v2229_v16 }
 0x272   : > { %2599 = vst [vmem:[%s4384_s7 + $0xf8] sm:$0xff] %v2534_v59 }
 0x273   : > { %2780 = shalt.err (!%p2777_p3)
}
 0x274   : > { %s2781_s5 = scalar_lea.hbm %s4542_s23, 4096  ;;  %s2785_s9 = scalar_lea.hbm %s4595_s4, 8192 }
 0x275   : > { %p2782_p4 = scmp.ne.s32.totalorder %s4542_s23, %s2781_s5  ;;  %p2786_p9 = scmp.lt.s32.totalorder %s4542_s23, %s4595_s4 }
 0x276   : > { %p2787_p10 = scmp.lt.s32.totalorder %s2785_s9, %s2781_s5 }
 0x277   : > { %p2783_p7 = pnand %p2782_p4, %p2896_p5 }
 0x278   : > { %p2788_p11 = por %p2787_p10, %p2786_p9 }
 0x279   : > { %p2784_p8 = pneg %p2783_p7 }
 0x27b   : > { %p2789_p12 = pnand %p2788_p11, %p2784_p8 }
 0x27d   : > { %2792 = shalt.err (!%p2789_p12)
}
 0x27e   : > { %s2831_s12 = smov 128   ;;  %s2832_s7 = smov 8  }
 0x27f   : > { %2725 = dma.vmem_to_hbm [thread:$0]  (%p2896_p5), %s4544_s14, 4096, %s4542_s23, %s4551_s19, %s2831_s12, %s2831_s12, %s2832_s7  }
 0x280 PF: > { %p2731_p13 = scmp.ge.s32.totalorder %s2827_s18, 2  ;;  %s2646_s13 = sand.u32 1, %s2815_s15  }
 0x281   : > { %s2647_s20 = scalar_lea.sflag [#allocation3], %s2646_s13 }
 0x282   : > { %p2728_p0 = pnand %p2731_p13, %p2900_p6 }
 0x284   : > { %p2729_p1 = pneg %p2728_p0 }
 0x286   : > { %2810 = dma.done.wait (%p2729_p1), %s2647_s20, 4096  }
 0x287   : > { %2812 = vsyncadd (%p2729_p1), %s2647_s20, 4294963200  ;;  %p15_p2 = scmp.ge.s32.totalorder %s2883_s21, 4   ;;  %s4924_s15 = smov %s2819_s16 }
 0x288   : > { %s4925_s16 = smov %s2823_s17  ;;  %s4926_s17 = smov %s2894_s24 }
 0x289   : > { %s4927_s18 = smov %s2883_s21  ;;  %17 = sbr.rel (!%p15_p2) target bundleno = 3 (0x3), region = 79 }
 0x28e   :  { %2652 = vsyncpa [#allocation3], 1 }
 0x28f   :  { %2654 = vsyncpa [#allocation3 + $0x1], 1 }

</bundles_post_ra>
